<compile_context>
chip_gen: v6e
topology: v6e:2x2x1
jax: 0.10.0
libtpu: 0.0.40
codegen_flags: <defaults>
</compile_context>

<pallas_src>
import math
from functools import partial

import numpy as np
import jax
import jax.numpy as jnp
from jax.experimental import pallas as pl
from jax.experimental.pallas import tpu as pltpu

_LN_EPS = 1e-5        # PyTorch nn.LayerNorm default
_NEG_FILL = -1e9      # reference masked_fill value


# ----------------------------- in-kernel math helpers -----------------------------

def _layernorm(y, gamma, beta):
    mu = jnp.mean(y, axis=-1, keepdims=True)
    var = jnp.mean((y - mu) ** 2, axis=-1, keepdims=True)
    return (y - mu) * jax.lax.rsqrt(var + _LN_EPS) * gamma + beta


def _mha(q_in, kv_in, msk, wqkv_ref, bqkv_ref, wc_ref, bc_ref, *, heads, scale):
    """Multi-head attention + concat projection, all heads handled with leading-axis
    (head-major) weight views — no lane slicing, no concatenate.

    q_in:  (Lq, D) f32    kv_in: (Lk, D) f32    msk: (1|Lq, Lk) int32
    wqkv_ref: (3, H, D, dk) bf16   bqkv_ref: (3, H, 1, dk) f32
    wc_ref:   (H, dk, D)   bf16    bc_ref:   (1, D) f32
    returns (Lq, D) f32 "interacted" (= concat-linear output, pre-residual/LN).
    """
    lq, d = q_in.shape
    # Casts hoisted out of the head loop (one bf16 cast per operand).
    qb = q_in.astype(jnp.bfloat16)
    kvb = kv_in.astype(jnp.bfloat16)
    neg = (msk == 0)                               # hoisted mask compare
    acc = jnp.zeros((lq, d), jnp.float32)
    for h in range(heads):                         # static head loop
        qh = (jnp.dot(qb, wqkv_ref[0, h], preferred_element_type=jnp.float32)
              + bqkv_ref[0, h])
        kh = (jnp.dot(kvb, wqkv_ref[1, h], preferred_element_type=jnp.float32)
              + bqkv_ref[1, h])
        vh = (jnp.dot(kvb, wqkv_ref[2, h], preferred_element_type=jnp.float32)
              + bqkv_ref[2, h])
        s = jax.lax.dot_general(qh.astype(jnp.bfloat16), kh.astype(jnp.bfloat16),
                                (((1,), (1,)), ((), ())),
                                preferred_element_type=jnp.float32) * scale
        s = jnp.where(neg, _NEG_FILL, s)           # mask-fill in f32
        s = s - jnp.max(s, axis=-1, keepdims=True)
        p = jnp.exp(s)
        inv = pl.reciprocal(jnp.sum(p, axis=-1, keepdims=True), approx=True)
        w = (p * inv).astype(jnp.bfloat16)
        ctx = jnp.dot(w, vh.astype(jnp.bfloat16), preferred_element_type=jnp.float32)
        # concat-linear folded per head: out += ctx_h @ Wc[h*dk:(h+1)*dk, :]
        acc = acc + jnp.dot(ctx.astype(jnp.bfloat16), wc_ref[h],
                            preferred_element_type=jnp.float32)
    return acc + bc_ref[...]


# ----------------------------- fused encoder-layer kernel -----------------------------

def _encoder_layer_kernel(x_ref, m_ref, wqkv_ref, bqkv_ref, wc_ref, bc_ref,
                          g_ref, b_ref, w1_ref, b1_ref, w2_ref, b2_ref, o_ref,
                          *, heads, scale):
    x = x_ref[0]                                   # (L, D) f32
    g = g_ref[...]
    bb = b_ref[...]
    # self attention + residual + LN  (reference shares one LayerNorm per layer)
    inter = _mha(x, x, m_ref[0], wqkv_ref, bqkv_ref, wc_ref, bc_ref,
                 heads=heads, scale=scale)
    y = _layernorm(inter + x, g, bb)
    # FFN (fc1 -> relu -> fc2) + residual + LN
    h = jnp.maximum(jnp.dot(y.astype(jnp.bfloat16), w1_ref[...],
                            preferred_element_type=jnp.float32) + b1_ref[...], 0.0)
    z = (jnp.dot(h.astype(jnp.bfloat16), w2_ref[...],
                 preferred_element_type=jnp.float32) + b2_ref[...] + y)
    o_ref[0] = _layernorm(z, g, bb)


def encoder_layer_fused(p, x3, mask3, heads):
    """x3: (B, L, D) f32, mask3: (B, 1|L, L) int32 -> (B, L, D) f32. One pallas_call."""
    bsz, l, d = x3.shape
    _, mlq, lk = mask3.shape
    dk = d // heads
    dff = p["ffn"]["w1"].shape[1]
    kernel = partial(_encoder_layer_kernel, heads=heads, scale=1.0 / math.sqrt(dk))
    const2 = lambda b: (0, 0)
    return pl.pallas_call(
        kernel,
        out_shape=jax.ShapeDtypeStruct((bsz, l, d), jnp.float32),
        grid=(bsz,),
        in_specs=[
            pl.BlockSpec((1, l, d), lambda b: (b, 0, 0)),
            pl.BlockSpec((1, mlq, lk), lambda b: (b, 0, 0)),
            pl.BlockSpec((3, heads, d, dk), lambda b: (0, 0, 0, 0)),   # weights resident
            pl.BlockSpec((3, heads, 1, dk), lambda b: (0, 0, 0, 0)),
            pl.BlockSpec((heads, dk, d), lambda b: (0, 0, 0)),
            pl.BlockSpec((1, d), const2),
            pl.BlockSpec((1, d), const2),
            pl.BlockSpec((1, d), const2),
            pl.BlockSpec((d, dff), const2),
            pl.BlockSpec((1, dff), const2),
            pl.BlockSpec((dff, d), const2),
            pl.BlockSpec((1, d), const2),
        ],
        out_specs=pl.BlockSpec((1, l, d), lambda b: (b, 0, 0)),
        compiler_params=pltpu.CompilerParams(dimension_semantics=("parallel",)),
    )(x3, mask3,
      p["mha"]["wqkv"], p["mha"]["bqkv"], p["mha"]["wc"], p["mha"]["bc"].reshape(1, d),
      p["ln"]["gamma"].reshape(1, d), p["ln"]["beta"].reshape(1, d),
      p["ffn"]["w1"], p["ffn"]["b1"].reshape(1, dff),
      p["ffn"]["w2"], p["ffn"]["b2"].reshape(1, d))


# ----------------------------- fused decoder-layer kernel -----------------------------

def _decoder_layer_kernel(x_ref, enc_ref, tm_ref, sm_ref,
                          wqkv_s_ref, bqkv_s_ref, wc_s_ref, bc_s_ref,
                          wqkv_x_ref, bqkv_x_ref, wc_x_ref, bc_x_ref,
                          g_ref, b_ref, w1_ref, b1_ref, w2_ref, b2_ref, o_ref,
                          *, heads, scale):
    x = x_ref[0]                                   # (Lt, D)
    enc = enc_ref[0]                               # (Ls, D)
    g = g_ref[...]
    bb = b_ref[...]
    # masked self-attention + residual + LN
    attn1 = _mha(x, x, tm_ref[0], wqkv_s_ref, bqkv_s_ref, wc_s_ref, bc_s_ref,
                 heads=heads, scale=scale)
    query = _layernorm(attn1 + x, g, bb)
    # cross attention over encoder output + residual + LN
    attn2 = _mha(query, enc, sm_ref[0], wqkv_x_ref, bqkv_x_ref, wc_x_ref, bc_x_ref,
                 heads=heads, scale=scale)
    inter = _layernorm(attn2 + query, g, bb)
    # FFN + residual + LN
    h = jnp.maximum(jnp.dot(inter.astype(jnp.bfloat16), w1_ref[...],
                            preferred_element_type=jnp.float32) + b1_ref[...], 0.0)
    z = (jnp.dot(h.astype(jnp.bfloat16), w2_ref[...],
                 preferred_element_type=jnp.float32) + b2_ref[...] + inter)
    o_ref[0] = _layernorm(z, g, bb)


def decoder_layer_fused(p, x3, enc3, src_mask3, tgt_mask3, heads):
    """x3: (B, Lt, D); enc3: (B, Ls, D); masks int32 -> (B, Lt, D). One pallas_call."""
    bsz, lt, d = x3.shape
    ls = enc3.shape[1]
    _, tmq, tmk = tgt_mask3.shape
    _, smq, smk = src_mask3.shape
    dk = d // heads
    dff = p["ffn"]["w1"].shape[1]
    kernel = partial(_decoder_layer_kernel, heads=heads, scale=1.0 / math.sqrt(dk))
    const2 = lambda b: (0, 0)
    return pl.pallas_call(
        kernel,
        out_shape=jax.ShapeDtypeStruct((bsz, lt, d), jnp.float32),
        grid=(bsz,),
        in_specs=[
            pl.BlockSpec((1, lt, d), lambda b: (b, 0, 0)),
            pl.BlockSpec((1, ls, d), lambda b: (b, 0, 0)),
            pl.BlockSpec((1, tmq, tmk), lambda b: (b, 0, 0)),
            pl.BlockSpec((1, smq, smk), lambda b: (b, 0, 0)),
            pl.BlockSpec((3, heads, d, dk), lambda b: (0, 0, 0, 0)),
            pl.BlockSpec((3, heads, 1, dk), lambda b: (0, 0, 0, 0)),
            pl.BlockSpec((heads, dk, d), lambda b: (0, 0, 0)),
            pl.BlockSpec((1, d), const2),
            pl.BlockSpec((3, heads, d, dk), lambda b: (0, 0, 0, 0)),
            pl.BlockSpec((3, heads, 1, dk), lambda b: (0, 0, 0, 0)),
            pl.BlockSpec((heads, dk, d), lambda b: (0, 0, 0)),
            pl.BlockSpec((1, d), const2),
            pl.BlockSpec((1, d), const2),
            pl.BlockSpec((1, d), const2),
            pl.BlockSpec((d, dff), const2),
            pl.BlockSpec((1, dff), const2),
            pl.BlockSpec((dff, d), const2),
            pl.BlockSpec((1, d), const2),
        ],
        out_specs=pl.BlockSpec((1, lt, d), lambda b: (b, 0, 0)),
        compiler_params=pltpu.CompilerParams(dimension_semantics=("parallel",)),
    )(x3, enc3, tgt_mask3, src_mask3,
      p["self_mha"]["wqkv"], p["self_mha"]["bqkv"],
      p["self_mha"]["wc"], p["self_mha"]["bc"].reshape(1, d),
      p["src_mha"]["wqkv"], p["src_mha"]["bqkv"],
      p["src_mha"]["wc"], p["src_mha"]["bc"].reshape(1, d),
      p["ln"]["gamma"].reshape(1, d), p["ln"]["beta"].reshape(1, d),
      p["ffn"]["w1"], p["ffn"]["b1"].reshape(1, dff),
      p["ffn"]["w2"], p["ffn"]["b2"].reshape(1, d))


# ----------------------------- logits + log_softmax (lane-dense, padded vocab) ---------

def _logit_ls_kernel(x_ref, w_ref, b_ref, o_ref):
    z = (jnp.dot(x_ref[...].astype(jnp.bfloat16), w_ref[...],
                 preferred_element_type=jnp.float32) + b_ref[...])
    z = z - jnp.max(z, axis=-1, keepdims=True)
    o_ref[...] = z - jnp.log(jnp.sum(jnp.exp(z), axis=-1, keepdims=True))


def logit_log_softmax_padded(x2d, w_pad, b_pad):
    """x2d: (M, D) f32; w_pad: (D, Vpad) bf16 (zero-padded cols);
    b_pad: (1, Vpad) f32 with -1e9 in padded cols  -> (M, Vpad) f32 lane-dense output.
    Padded columns contribute exp(-1e9 - max) == 0, so real columns are exact."""
    m, d = x2d.shape
    vpad = w_pad.shape[1]
    tm = 8 if m % 8 == 0 else m        # >=2 grid steps at M=16 so v7x uses both TCs
    return pl.pallas_call(
        _logit_ls_kernel,
        out_shape=jax.ShapeDtypeStruct((m, vpad), jnp.float32),
        grid=(m // tm,),
        in_specs=[
            pl.BlockSpec((tm, d), lambda i: (i, 0)),
            pl.BlockSpec((d, vpad), lambda i: (0, 0)),
            pl.BlockSpec((1, vpad), lambda i: (0, 0)),
        ],
        out_specs=pl.BlockSpec((tm, vpad), lambda i: (i, 0)),
        compiler_params=pltpu.CompilerParams(dimension_semantics=("parallel",)),
    )(x2d, w_pad, b_pad)


# ----------------------------- parameter setup -----------------------------

def _init_linear(key, din, dout):
    k1, k2 = jax.random.split(key)
    bound = 1.0 / math.sqrt(din)
    w = jax.random.uniform(k1, (din, dout), jnp.float32, -bound, bound)
    b = jax.random.uniform(k2, (dout,), jnp.float32, -bound, bound)
    return w, b


def _init_mha(key, d_model, heads):
    """Head-major layout: wqkv (3, H, D, dk) bf16, bqkv (3, H, 1, dk) f32,
    wc (H, dk, D) bf16, bc (D,) f32 — heads indexed on leading ref axes in-kernel."""
    dk = d_model // heads
    ks = jax.random.split(key, 4)
    wq, bq = _init_linear(ks[0], d_model, d_model)
    wk, bk = _init_linear(ks[1], d_model, d_model)
    wv, bv = _init_linear(ks[2], d_model, d_model)
    wc, bc = _init_linear(ks[3], d_model, d_model)

    def w_hm(w):   # (D, D) -> (H, D, dk): head h uses output cols [h*dk:(h+1)*dk]
        return jnp.transpose(w.reshape(d_model, heads, dk), (1, 0, 2))

    def b_hm(b):   # (D,) -> (H, 1, dk)
        return b.reshape(heads, 1, dk)

    return {
        "wqkv": jnp.stack([w_hm(wq), w_hm(wk), w_hm(wv)], axis=0).astype(jnp.bfloat16),
        "bqkv": jnp.stack([b_hm(bq), b_hm(bk), b_hm(bv)], axis=0),
        "wc": wc.reshape(heads, dk, d_model).astype(jnp.bfloat16),  # rows head-major
        "bc": bc,
    }


def _init_ffn(key, d_model, middle_dim=2048):
    k1, k2 = jax.random.split(key)
    w1, b1 = _init_linear(k1, d_model, middle_dim)
    w2, b2 = _init_linear(k2, middle_dim, d_model)
    return {"w1": w1.astype(jnp.bfloat16), "b1": b1,
            "w2": w2.astype(jnp.bfloat16), "b2": b2}


def _init_ln(d_model):
    return {"gamma": jnp.ones((d_model,), jnp.float32),
            "beta": jnp.zeros((d_model,), jnp.float32)}


def _init_encoder_layer(key, d_model, heads):
    k1, k2 = jax.random.split(key)
    # NOTE: the single "ln" is shared by both LN calls — matches the PyTorch reference.
    return {"ln": _init_ln(d_model), "mha": _init_mha(k1, d_model, heads),
            "ffn": _init_ffn(k2, d_model)}


def _init_decoder_layer(key, d_model, heads):
    k1, k2, k3 = jax.random.split(key, 3)
    return {"ln": _init_ln(d_model), "self_mha": _init_mha(k1, d_model, heads),
            "src_mha": _init_mha(k2, d_model, heads), "ffn": _init_ffn(k3, d_model)}


def make_positional_encoding(max_len, d_model):
    # Reproduces the (quirky) PyTorch loop exactly (requires even d_model).
    pe = np.zeros((max_len, d_model), dtype=np.float32)
    for pos in range(max_len):
        for i in range(0, d_model, 2):
            pe[pos, i] = math.sin(pos / 10000 ** (2 * i / d_model))
            pe[pos, i + 1] = math.cos(pos / 10000 ** (2 * (i + 1) / d_model))
    return jnp.asarray(pe)[None]  # (1, max_len, d_model)


def init_transformer_params(key, d_model, heads, num_layers, vocab_size, max_len=260):
    keys = jax.random.split(key, 2 + 2 * num_layers)
    wl, bl = _init_linear(keys[1], d_model, vocab_size)
    # Pad vocab to a multiple of 128 so the log-softmax output block is lane-dense.
    vpad = max(128, ((vocab_size + 127) // 128) * 128)
    wl_pad = jnp.zeros((d_model, vpad), jnp.float32).at[:, :vocab_size].set(wl)
    bl_pad = jnp.full((vpad,), _NEG_FILL, jnp.float32).at[:vocab_size].set(bl)
    return {
        "embed": jax.random.normal(keys[0], (vocab_size, d_model), jnp.float32),
        "pe": make_positional_encoding(max_len, d_model),
        "encoder": [_init_encoder_layer(keys[2 + i], d_model, heads)
                    for i in range(num_layers)],
        "decoder": [_init_decoder_layer(keys[2 + num_layers + i], d_model, heads)
                    for i in range(num_layers)],
        "logit_w_pad": wl_pad.astype(jnp.bfloat16),
        "logit_b_pad": bl_pad.reshape(1, vpad),
        "d_model": d_model, "heads": heads, "vocab_size": vocab_size,
    }


# ----------------------------- model forward -----------------------------

def embed(params, word_ids):
    d_model = params["d_model"]
    # TODO(synk): embedding gather is data-dependent; kept as plain-JAX glue (jnp.take).
    e = jnp.take(params["embed"], word_ids, axis=0) * math.sqrt(d_model)
    # TODO(synk): dropout layers are identity (eval mode), not implemented as kernels.
    return e + params["pe"][:, :word_ids.shape[1]]


def transformer_forward(params, src_words, src_mask, target_words, target_mask):
    heads = params["heads"]
    src_mask3 = src_mask[:, 0]        # (B, 1|Ls, Ls)
    tgt_mask3 = target_mask[:, 0]     # (B, Lt, Lt)
    # encode: one fused pallas_call per encoder layer
    enc = embed(params, src_words)
    for layer in params["encoder"]:
        enc = encoder_layer_fused(layer, enc, src_mask3, heads)
    # decode: one fused pallas_call per decoder layer
    dec = embed(params, target_words)
    for layer in params["decoder"]:
        dec = decoder_layer_fused(layer, dec, enc, src_mask3, tgt_mask3, heads)
    # logits + log_softmax(dim=2), lane-dense padded vocab, sliced back in the wrapper
    bsz, lt, d = dec.shape
    logp = logit_log_softmax_padded(dec.reshape(-1, d),
                                    params["logit_w_pad"], params["logit_b_pad"])
    return logp[:, :params["vocab_size"]].reshape(bsz, lt, -1)


# ----------------------------- main -----------------------------

if __name__ == "__main__":
    d_model = 32
    heads = 4
    num_layers = 2
    word_map = {f"w{i}": i for i in range(16)}   # vocab_size = 16
    vocab_size = len(word_map)
    B, Ls, Lt = 2, 8, 8

    key = jax.random.PRNGKey(0)
    pkey, skey, tkey = jax.random.split(key, 3)
    params = init_transformer_params(pkey, d_model, heads, num_layers,
                                     vocab_size, max_len=260)

    src_words = jax.random.randint(skey, (B, Ls), 0, vocab_size, dtype=jnp.int32)
    target_words = jax.random.randint(tkey, (B, Lt), 0, vocab_size, dtype=jnp.int32)
    src_mask = jnp.ones((B, 1, 1, Ls), dtype=jnp.int32)
    target_mask = jnp.tril(jnp.ones((Lt, Lt), dtype=jnp.int32))[None, None]
    target_mask = jnp.broadcast_to(target_mask, (B, 1, Lt, Lt))

    out = transformer_forward(params, src_words, src_mask, target_words, target_mask)
    out = jax.block_until_ready(out)

    assert out.shape == (B, Lt, vocab_size), out.shape
    assert bool(jnp.all(jnp.isfinite(out)))
    print("KERNEL_OK")
</pallas_src>

<mosaic_0001>
module attributes {stable_mosaic.version = 11 : i64} {
  func.func @_encoder_layer_kernel(%arg0: i32, %arg1: memref<1x8x32xf32, #tpu.memory_space<vmem>>, %arg2: memref<1x1x8xi32, #tpu.memory_space<vmem>>, %arg3: memref<3x4x32x8xbf16, #tpu.memory_space<vmem>>, %arg4: memref<3x4x1x8xf32, #tpu.memory_space<vmem>>, %arg5: memref<4x8x32xbf16, #tpu.memory_space<vmem>>, %arg6: memref<1x32xf32, #tpu.memory_space<vmem>>, %arg7: memref<1x32xf32, #tpu.memory_space<vmem>>, %arg8: memref<1x32xf32, #tpu.memory_space<vmem>>, %arg9: memref<32x2048xbf16, #tpu.memory_space<vmem>>, %arg10: memref<1x2048xf32, #tpu.memory_space<vmem>>, %arg11: memref<2048x32xbf16, #tpu.memory_space<vmem>>, %arg12: memref<1x32xf32, #tpu.memory_space<vmem>>, %arg13: memref<1x8x32xf32, #tpu.memory_space<vmem>>) attributes {dimension_semantics = [#tpu.dimension_semantics<parallel>], iteration_bounds = array<i64: 2>, scalar_prefetch = 0 : i64, scratch_operands = 0 : i64, tpu.core_type = #tpu.core_type<tc>, window_params = [{transform_indices = @transform_0, window_bounds = array<i64: 1, 8, 32>}, {transform_indices = @transform_1, window_bounds = array<i64: 1, 1, 8>}, {pipeline_mode = #tpu.pipeline_mode<synchronous>, transform_indices = @transform_2, window_bounds = array<i64: 3, 4, 32, 8>}, {pipeline_mode = #tpu.pipeline_mode<synchronous>, transform_indices = @transform_3, window_bounds = array<i64: 3, 4, 1, 8>}, {pipeline_mode = #tpu.pipeline_mode<synchronous>, transform_indices = @transform_4, window_bounds = array<i64: 4, 8, 32>}, {pipeline_mode = #tpu.pipeline_mode<synchronous>, transform_indices = @transform_5, window_bounds = array<i64: 1, 32>}, {pipeline_mode = #tpu.pipeline_mode<synchronous>, transform_indices = @transform_6, window_bounds = array<i64: 1, 32>}, {pipeline_mode = #tpu.pipeline_mode<synchronous>, transform_indices = @transform_7, window_bounds = array<i64: 1, 32>}, {pipeline_mode = #tpu.pipeline_mode<synchronous>, transform_indices = @transform_8, window_bounds = array<i64: 32, 2048>}, {pipeline_mode = #tpu.pipeline_mode<synchronous>, transform_indices = @transform_9, window_bounds = array<i64: 1, 2048>}, {pipeline_mode = #tpu.pipeline_mode<synchronous>, transform_indices = @transform_10, window_bounds = array<i64: 2048, 32>}, {pipeline_mode = #tpu.pipeline_mode<synchronous>, transform_indices = @transform_11, window_bounds = array<i64: 1, 32>}, {transform_indices = @transform_12, window_bounds = array<i64: 1, 8, 32>}]} {
    %c0 = arith.constant 0 : index
    %c0_0 = arith.constant 0 : index
    %c0_1 = arith.constant 0 : index
    %0 = vector.load %arg1[%c0, %c0_0, %c0_1] : memref<1x8x32xf32, #tpu.memory_space<vmem>>, vector<1x8x32xf32>
    %1 = vector.shape_cast %0 : vector<1x8x32xf32> to vector<8x32xf32>
    %c0_2 = arith.constant 0 : index
    %c0_3 = arith.constant 0 : index
    %2 = vector.load %arg7[%c0_2, %c0_3] : memref<1x32xf32, #tpu.memory_space<vmem>>, vector<1x32xf32>
    %c0_4 = arith.constant 0 : index
    %c0_5 = arith.constant 0 : index
    %3 = vector.load %arg8[%c0_4, %c0_5] : memref<1x32xf32, #tpu.memory_space<vmem>>, vector<1x32xf32>
    %c0_6 = arith.constant 0 : index
    %c0_7 = arith.constant 0 : index
    %c0_8 = arith.constant 0 : index
    %4 = vector.load %arg2[%c0_6, %c0_7, %c0_8] : memref<1x1x8xi32, #tpu.memory_space<vmem>>, vector<1x1x8xi32>
    %5 = vector.shape_cast %4 : vector<1x1x8xi32> to vector<1x8xi32>
    %6 = arith.truncf %1 : vector<8x32xf32> to vector<8x32xbf16>
    %7 = arith.truncf %1 : vector<8x32xf32> to vector<8x32xbf16>
    %c0_i32 = arith.constant 0 : i32
    %8 = vector.broadcast %c0_i32 : i32 to vector<1x8xi32>
    %9 = arith.cmpi eq, %5, %8 : vector<1x8xi32>
    %cst = arith.constant 0.000000e+00 : f32
    %10 = vector.broadcast %cst : f32 to vector<8x32xf32>
    %c0_9 = arith.constant 0 : index
    %c0_10 = arith.constant 0 : index
    %c0_11 = arith.constant 0 : index
    %c0_12 = arith.constant 0 : index
    %11 = vector.load %arg3[%c0_9, %c0_10, %c0_11, %c0_12] : memref<3x4x32x8xbf16, #tpu.memory_space<vmem>>, vector<1x1x32x8xbf16>
    %12 = vector.shape_cast %11 : vector<1x1x32x8xbf16> to vector<32x8xbf16>
    %cst_13 = arith.constant dense<0.000000e+00> : vector<8x8xf32>
    %13 = tpu.matmul %6, %12, %cst_13 {dimension_numbers = #tpu.dot_dimension_numbers<[1], [0], [0], [1], [0, 0, 1, 1], [], []>} : vector<8x32xbf16>, vector<32x8xbf16>, vector<8x8xf32> -> vector<8x8xf32>
    %c0_14 = arith.constant 0 : index
    %c0_15 = arith.constant 0 : index
    %c0_16 = arith.constant 0 : index
    %c0_17 = arith.constant 0 : index
    %14 = vector.load %arg4[%c0_14, %c0_15, %c0_16, %c0_17] : memref<3x4x1x8xf32, #tpu.memory_space<vmem>>, vector<1x1x1x8xf32>
    %15 = vector.shape_cast %14 : vector<1x1x1x8xf32> to vector<1x8xf32>
    %16 = vector.broadcast %15 : vector<1x8xf32> to vector<8x8xf32>
    %17 = arith.addf %13, %16 : vector<8x8xf32>
    %c1 = arith.constant 1 : index
    %c0_18 = arith.constant 0 : index
    %c0_19 = arith.constant 0 : index
    %c0_20 = arith.constant 0 : index
    %18 = vector.load %arg3[%c1, %c0_18, %c0_19, %c0_20] : memref<3x4x32x8xbf16, #tpu.memory_space<vmem>>, vector<1x1x32x8xbf16>
    %19 = vector.shape_cast %18 : vector<1x1x32x8xbf16> to vector<32x8xbf16>
    %cst_21 = arith.constant dense<0.000000e+00> : vector<8x8xf32>
    %20 = tpu.matmul %7, %19, %cst_21 {dimension_numbers = #tpu.dot_dimension_numbers<[1], [0], [0], [1], [0, 0, 1, 1], [], []>} : vector<8x32xbf16>, vector<32x8xbf16>, vector<8x8xf32> -> vector<8x8xf32>
    %c1_22 = arith.constant 1 : index
    %c0_23 = arith.constant 0 : index
    %c0_24 = arith.constant 0 : index
    %c0_25 = arith.constant 0 : index
    %21 = vector.load %arg4[%c1_22, %c0_23, %c0_24, %c0_25] : memref<3x4x1x8xf32, #tpu.memory_space<vmem>>, vector<1x1x1x8xf32>
    %22 = vector.shape_cast %21 : vector<1x1x1x8xf32> to vector<1x8xf32>
    %23 = vector.broadcast %22 : vector<1x8xf32> to vector<8x8xf32>
    %24 = arith.addf %20, %23 : vector<8x8xf32>
    %c2 = arith.constant 2 : index
    %c0_26 = arith.constant 0 : index
    %c0_27 = arith.constant 0 : index
    %c0_28 = arith.constant 0 : index
    %25 = vector.load %arg3[%c2, %c0_26, %c0_27, %c0_28] : memref<3x4x32x8xbf16, #tpu.memory_space<vmem>>, vector<1x1x32x8xbf16>
    %26 = vector.shape_cast %25 : vector<1x1x32x8xbf16> to vector<32x8xbf16>
    %cst_29 = arith.constant dense<0.000000e+00> : vector<8x8xf32>
    %27 = tpu.matmul %7, %26, %cst_29 {dimension_numbers = #tpu.dot_dimension_numbers<[1], [0], [0], [1], [0, 0, 1, 1], [], []>} : vector<8x32xbf16>, vector<32x8xbf16>, vector<8x8xf32> -> vector<8x8xf32>
    %c2_30 = arith.constant 2 : index
    %c0_31 = arith.constant 0 : index
    %c0_32 = arith.constant 0 : index
    %c0_33 = arith.constant 0 : index
    %28 = vector.load %arg4[%c2_30, %c0_31, %c0_32, %c0_33] : memref<3x4x1x8xf32, #tpu.memory_space<vmem>>, vector<1x1x1x8xf32>
    %29 = vector.shape_cast %28 : vector<1x1x1x8xf32> to vector<1x8xf32>
    %30 = vector.broadcast %29 : vector<1x8xf32> to vector<8x8xf32>
    %31 = arith.addf %27, %30 : vector<8x8xf32>
    %32 = arith.truncf %17 : vector<8x8xf32> to vector<8x8xbf16>
    %33 = arith.truncf %24 : vector<8x8xf32> to vector<8x8xbf16>
    %cst_34 = arith.constant dense<0.000000e+00> : vector<8x8xf32>
    %34 = tpu.matmul %32, %33, %cst_34 {dimension_numbers = #tpu.dot_dimension_numbers<[1], [1], [0], [0], [0, 0, 1, 0], [], []>} : vector<8x8xbf16>, vector<8x8xbf16>, vector<8x8xf32> -> vector<8x8xf32>
    %cst_35 = arith.constant 0.353553385 : f32
    %35 = vector.broadcast %cst_35 : f32 to vector<8x8xf32>
    %36 = arith.mulf %34, %35 : vector<8x8xf32>
    %cst_36 = arith.constant -1.000000e+09 : f32
    %37 = vector.shape_cast %9 : vector<1x8xi1> to vector<1x8xi1>
    %38 = vector.broadcast %37 : vector<1x8xi1> to vector<8x8xi1>
    %39 = vector.broadcast %cst_36 : f32 to vector<8x8xf32>
    %40 = arith.select %38, %39, %36 : vector<8x8xi1>, vector<8x8xf32>
    %cst_37 = arith.constant dense<0xFF800000> : vector<8xf32>
    %41 = vector.multi_reduction <maximumf>, %40, %cst_37 [1] : vector<8x8xf32> to vector<8xf32>
    %42 = vector.shape_cast %41 : vector<8xf32> to vector<8x1xf32>
    %43 = vector.broadcast %42 : vector<8x1xf32> to vector<8x8xf32>
    %44 = arith.subf %40, %43 : vector<8x8xf32>
    %45 = math.exp %44 : vector<8x8xf32>
    %cst_38 = arith.constant dense<0.000000e+00> : vector<8xf32>
    %46 = vector.multi_reduction <add>, %45, %cst_38 [1] : vector<8x8xf32> to vector<8xf32>
    %47 = vector.shape_cast %46 : vector<8xf32> to vector<8x1xf32>
    %48 = tpu.reciprocal %47 {approx = true} : vector<8x1xf32> -> vector<8x1xf32>
    %49 = vector.broadcast %48 : vector<8x1xf32> to vector<8x8xf32>
    %50 = arith.mulf %45, %49 : vector<8x8xf32>
    %51 = arith.truncf %50 : vector<8x8xf32> to vector<8x8xbf16>
    %52 = arith.truncf %31 : vector<8x8xf32> to vector<8x8xbf16>
    %cst_39 = arith.constant dense<0.000000e+00> : vector<8x8xf32>
    %53 = tpu.matmul %51, %52, %cst_39 {dimension_numbers = #tpu.dot_dimension_numbers<[1], [0], [0], [1], [0, 0, 1, 1], [], []>} : vector<8x8xbf16>, vector<8x8xbf16>, vector<8x8xf32> -> vector<8x8xf32>
    %54 = arith.truncf %53 : vector<8x8xf32> to vector<8x8xbf16>
    %c0_40 = arith.constant 0 : index
    %c0_41 = arith.constant 0 : index
    %c0_42 = arith.constant 0 : index
    %55 = vector.load %arg5[%c0_40, %c0_41, %c0_42] : memref<4x8x32xbf16, #tpu.memory_space<vmem>>, vector<1x8x32xbf16>
    %56 = vector.shape_cast %55 : vector<1x8x32xbf16> to vector<8x32xbf16>
    %cst_43 = arith.constant dense<0.000000e+00> : vector<8x32xf32>
    %57 = tpu.matmul %54, %56, %cst_43 {dimension_numbers = #tpu.dot_dimension_numbers<[1], [0], [0], [1], [0, 0, 1, 1], [], []>} : vector<8x8xbf16>, vector<8x32xbf16>, vector<8x32xf32> -> vector<8x32xf32>
    %58 = arith.addf %10, %57 : vector<8x32xf32>
    %c0_44 = arith.constant 0 : index
    %c1_45 = arith.constant 1 : index
    %c0_46 = arith.constant 0 : index
    %c0_47 = arith.constant 0 : index
    %59 = vector.load %arg3[%c0_44, %c1_45, %c0_46, %c0_47] : memref<3x4x32x8xbf16, #tpu.memory_space<vmem>>, vector<1x1x32x8xbf16>
    %60 = vector.shape_cast %59 : vector<1x1x32x8xbf16> to vector<32x8xbf16>
    %cst_48 = arith.constant dense<0.000000e+00> : vector<8x8xf32>
    %61 = tpu.matmul %6, %60, %cst_48 {dimension_numbers = #tpu.dot_dimension_numbers<[1], [0], [0], [1], [0, 0, 1, 1], [], []>} : vector<8x32xbf16>, vector<32x8xbf16>, vector<8x8xf32> -> vector<8x8xf32>
    %c0_49 = arith.constant 0 : index
    %c1_50 = arith.constant 1 : index
    %c0_51 = arith.constant 0 : index
    %c0_52 = arith.constant 0 : index
    %62 = vector.load %arg4[%c0_49, %c1_50, %c0_51, %c0_52] : memref<3x4x1x8xf32, #tpu.memory_space<vmem>>, vector<1x1x1x8xf32>
    %63 = vector.shape_cast %62 : vector<1x1x1x8xf32> to vector<1x8xf32>
    %64 = vector.broadcast %63 : vector<1x8xf32> to vector<8x8xf32>
    %65 = arith.addf %61, %64 : vector<8x8xf32>
    %c1_53 = arith.constant 1 : index
    %c1_54 = arith.constant 1 : index
    %c0_55 = arith.constant 0 : index
    %c0_56 = arith.constant 0 : index
    %66 = vector.load %arg3[%c1_53, %c1_54, %c0_55, %c0_56] : memref<3x4x32x8xbf16, #tpu.memory_space<vmem>>, vector<1x1x32x8xbf16>
    %67 = vector.shape_cast %66 : vector<1x1x32x8xbf16> to vector<32x8xbf16>
    %cst_57 = arith.constant dense<0.000000e+00> : vector<8x8xf32>
    %68 = tpu.matmul %7, %67, %cst_57 {dimension_numbers = #tpu.dot_dimension_numbers<[1], [0], [0], [1], [0, 0, 1, 1], [], []>} : vector<8x32xbf16>, vector<32x8xbf16>, vector<8x8xf32> -> vector<8x8xf32>
    %c1_58 = arith.constant 1 : index
    %c1_59 = arith.constant 1 : index
    %c0_60 = arith.constant 0 : index
    %c0_61 = arith.constant 0 : index
    %69 = vector.load %arg4[%c1_58, %c1_59, %c0_60, %c0_61] : memref<3x4x1x8xf32, #tpu.memory_space<vmem>>, vector<1x1x1x8xf32>
    %70 = vector.shape_cast %69 : vector<1x1x1x8xf32> to vector<1x8xf32>
    %71 = vector.broadcast %70 : vector<1x8xf32> to vector<8x8xf32>
    %72 = arith.addf %68, %71 : vector<8x8xf32>
    %c2_62 = arith.constant 2 : index
    %c1_63 = arith.constant 1 : index
    %c0_64 = arith.constant 0 : index
    %c0_65 = arith.constant 0 : index
    %73 = vector.load %arg3[%c2_62, %c1_63, %c0_64, %c0_65] : memref<3x4x32x8xbf16, #tpu.memory_space<vmem>>, vector<1x1x32x8xbf16>
    %74 = vector.shape_cast %73 : vector<1x1x32x8xbf16> to vector<32x8xbf16>
    %cst_66 = arith.constant dense<0.000000e+00> : vector<8x8xf32>
    %75 = tpu.matmul %7, %74, %cst_66 {dimension_numbers = #tpu.dot_dimension_numbers<[1], [0], [0], [1], [0, 0, 1, 1], [], []>} : vector<8x32xbf16>, vector<32x8xbf16>, vector<8x8xf32> -> vector<8x8xf32>
    %c2_67 = arith.constant 2 : index
    %c1_68 = arith.constant 1 : index
    %c0_69 = arith.constant 0 : index
    %c0_70 = arith.constant 0 : index
    %76 = vector.load %arg4[%c2_67, %c1_68, %c0_69, %c0_70] : memref<3x4x1x8xf32, #tpu.memory_space<vmem>>, vector<1x1x1x8xf32>
    %77 = vector.shape_cast %76 : vector<1x1x1x8xf32> to vector<1x8xf32>
    %78 = vector.broadcast %77 : vector<1x8xf32> to vector<8x8xf32>
    %79 = arith.addf %75, %78 : vector<8x8xf32>
    %80 = arith.truncf %65 : vector<8x8xf32> to vector<8x8xbf16>
    %81 = arith.truncf %72 : vector<8x8xf32> to vector<8x8xbf16>
    %cst_71 = arith.constant dense<0.000000e+00> : vector<8x8xf32>
    %82 = tpu.matmul %80, %81, %cst_71 {dimension_numbers = #tpu.dot_dimension_numbers<[1], [1], [0], [0], [0, 0, 1, 0], [], []>} : vector<8x8xbf16>, vector<8x8xbf16>, vector<8x8xf32> -> vector<8x8xf32>
    %cst_72 = arith.constant 0.353553385 : f32
    %83 = vector.broadcast %cst_72 : f32 to vector<8x8xf32>
    %84 = arith.mulf %82, %83 : vector<8x8xf32>
    %cst_73 = arith.constant -1.000000e+09 : f32
    %85 = vector.shape_cast %9 : vector<1x8xi1> to vector<1x8xi1>
    %86 = vector.broadcast %85 : vector<1x8xi1> to vector<8x8xi1>
    %87 = vector.broadcast %cst_73 : f32 to vector<8x8xf32>
    %88 = arith.select %86, %87, %84 : vector<8x8xi1>, vector<8x8xf32>
    %cst_74 = arith.constant dense<0xFF800000> : vector<8xf32>
    %89 = vector.multi_reduction <maximumf>, %88, %cst_74 [1] : vector<8x8xf32> to vector<8xf32>
    %90 = vector.shape_cast %89 : vector<8xf32> to vector<8x1xf32>
    %91 = vector.broadcast %90 : vector<8x1xf32> to vector<8x8xf32>
    %92 = arith.subf %88, %91 : vector<8x8xf32>
    %93 = math.exp %92 : vector<8x8xf32>
    %cst_75 = arith.constant dense<0.000000e+00> : vector<8xf32>
    %94 = vector.multi_reduction <add>, %93, %cst_75 [1] : vector<8x8xf32> to vector<8xf32>
    %95 = vector.shape_cast %94 : vector<8xf32> to vector<8x1xf32>
    %96 = tpu.reciprocal %95 {approx = true} : vector<8x1xf32> -> vector<8x1xf32>
    %97 = vector.broadcast %96 : vector<8x1xf32> to vector<8x8xf32>
    %98 = arith.mulf %93, %97 : vector<8x8xf32>
    %99 = arith.truncf %98 : vector<8x8xf32> to vector<8x8xbf16>
    %100 = arith.truncf %79 : vector<8x8xf32> to vector<8x8xbf16>
    %cst_76 = arith.constant dense<0.000000e+00> : vector<8x8xf32>
    %101 = tpu.matmul %99, %100, %cst_76 {dimension_numbers = #tpu.dot_dimension_numbers<[1], [0], [0], [1], [0, 0, 1, 1], [], []>} : vector<8x8xbf16>, vector<8x8xbf16>, vector<8x8xf32> -> vector<8x8xf32>
    %102 = arith.truncf %101 : vector<8x8xf32> to vector<8x8xbf16>
    %c1_77 = arith.constant 1 : index
    %c0_78 = arith.constant 0 : index
    %c0_79 = arith.constant 0 : index
    %103 = vector.load %arg5[%c1_77, %c0_78, %c0_79] : memref<4x8x32xbf16, #tpu.memory_space<vmem>>, vector<1x8x32xbf16>
    %104 = vector.shape_cast %103 : vector<1x8x32xbf16> to vector<8x32xbf16>
    %cst_80 = arith.constant dense<0.000000e+00> : vector<8x32xf32>
    %105 = tpu.matmul %102, %104, %cst_80 {dimension_numbers = #tpu.dot_dimension_numbers<[1], [0], [0], [1], [0, 0, 1, 1], [], []>} : vector<8x8xbf16>, vector<8x32xbf16>, vector<8x32xf32> -> vector<8x32xf32>
    %106 = arith.addf %58, %105 : vector<8x32xf32>
    %c0_81 = arith.constant 0 : index
    %c2_82 = arith.constant 2 : index
    %c0_83 = arith.constant 0 : index
    %c0_84 = arith.constant 0 : index
    %107 = vector.load %arg3[%c0_81, %c2_82, %c0_83, %c0_84] : memref<3x4x32x8xbf16, #tpu.memory_space<vmem>>, vector<1x1x32x8xbf16>
    %108 = vector.shape_cast %107 : vector<1x1x32x8xbf16> to vector<32x8xbf16>
    %cst_85 = arith.constant dense<0.000000e+00> : vector<8x8xf32>
    %109 = tpu.matmul %6, %108, %cst_85 {dimension_numbers = #tpu.dot_dimension_numbers<[1], [0], [0], [1], [0, 0, 1, 1], [], []>} : vector<8x32xbf16>, vector<32x8xbf16>, vector<8x8xf32> -> vector<8x8xf32>
    %c0_86 = arith.constant 0 : index
    %c2_87 = arith.constant 2 : index
    %c0_88 = arith.constant 0 : index
    %c0_89 = arith.constant 0 : index
    %110 = vector.load %arg4[%c0_86, %c2_87, %c0_88, %c0_89] : memref<3x4x1x8xf32, #tpu.memory_space<vmem>>, vector<1x1x1x8xf32>
    %111 = vector.shape_cast %110 : vector<1x1x1x8xf32> to vector<1x8xf32>
    %112 = vector.broadcast %111 : vector<1x8xf32> to vector<8x8xf32>
    %113 = arith.addf %109, %112 : vector<8x8xf32>
    %c1_90 = arith.constant 1 : index
    %c2_91 = arith.constant 2 : index
    %c0_92 = arith.constant 0 : index
    %c0_93 = arith.constant 0 : index
    %114 = vector.load %arg3[%c1_90, %c2_91, %c0_92, %c0_93] : memref<3x4x32x8xbf16, #tpu.memory_space<vmem>>, vector<1x1x32x8xbf16>
    %115 = vector.shape_cast %114 : vector<1x1x32x8xbf16> to vector<32x8xbf16>
    %cst_94 = arith.constant dense<0.000000e+00> : vector<8x8xf32>
    %116 = tpu.matmul %7, %115, %cst_94 {dimension_numbers = #tpu.dot_dimension_numbers<[1], [0], [0], [1], [0, 0, 1, 1], [], []>} : vector<8x32xbf16>, vector<32x8xbf16>, vector<8x8xf32> -> vector<8x8xf32>
    %c1_95 = arith.constant 1 : index
    %c2_96 = arith.constant 2 : index
    %c0_97 = arith.constant 0 : index
    %c0_98 = arith.constant 0 : index
    %117 = vector.load %arg4[%c1_95, %c2_96, %c0_97, %c0_98] : memref<3x4x1x8xf32, #tpu.memory_space<vmem>>, vector<1x1x1x8xf32>
    %118 = vector.shape_cast %117 : vector<1x1x1x8xf32> to vector<1x8xf32>
    %119 = vector.broadcast %118 : vector<1x8xf32> to vector<8x8xf32>
    %120 = arith.addf %116, %119 : vector<8x8xf32>
    %c2_99 = arith.constant 2 : index
    %c2_100 = arith.constant 2 : index
    %c0_101 = arith.constant 0 : index
    %c0_102 = arith.constant 0 : index
    %121 = vector.load %arg3[%c2_99, %c2_100, %c0_101, %c0_102] : memref<3x4x32x8xbf16, #tpu.memory_space<vmem>>, vector<1x1x32x8xbf16>
    %122 = vector.shape_cast %121 : vector<1x1x32x8xbf16> to vector<32x8xbf16>
    %cst_103 = arith.constant dense<0.000000e+00> : vector<8x8xf32>
    %123 = tpu.matmul %7, %122, %cst_103 {dimension_numbers = #tpu.dot_dimension_numbers<[1], [0], [0], [1], [0, 0, 1, 1], [], []>} : vector<8x32xbf16>, vector<32x8xbf16>, vector<8x8xf32> -> vector<8x8xf32>
    %c2_104 = arith.constant 2 : index
    %c2_105 = arith.constant 2 : index
    %c0_106 = arith.constant 0 : index
    %c0_107 = arith.constant 0 : index
    %124 = vector.load %arg4[%c2_104, %c2_105, %c0_106, %c0_107] : memref<3x4x1x8xf32, #tpu.memory_space<vmem>>, vector<1x1x1x8xf32>
    %125 = vector.shape_cast %124 : vector<1x1x1x8xf32> to vector<1x8xf32>
    %126 = vector.broadcast %125 : vector<1x8xf32> to vector<8x8xf32>
    %127 = arith.addf %123, %126 : vector<8x8xf32>
    %128 = arith.truncf %113 : vector<8x8xf32> to vector<8x8xbf16>
    %129 = arith.truncf %120 : vector<8x8xf32> to vector<8x8xbf16>
    %cst_108 = arith.constant dense<0.000000e+00> : vector<8x8xf32>
    %130 = tpu.matmul %128, %129, %cst_108 {dimension_numbers = #tpu.dot_dimension_numbers<[1], [1], [0], [0], [0, 0, 1, 0], [], []>} : vector<8x8xbf16>, vector<8x8xbf16>, vector<8x8xf32> -> vector<8x8xf32>
    %cst_109 = arith.constant 0.353553385 : f32
    %131 = vector.broadcast %cst_109 : f32 to vector<8x8xf32>
    %132 = arith.mulf %130, %131 : vector<8x8xf32>
    %cst_110 = arith.constant -1.000000e+09 : f32
    %133 = vector.shape_cast %9 : vector<1x8xi1> to vector<1x8xi1>
    %134 = vector.broadcast %133 : vector<1x8xi1> to vector<8x8xi1>
    %135 = vector.broadcast %cst_110 : f32 to vector<8x8xf32>
    %136 = arith.select %134, %135, %132 : vector<8x8xi1>, vector<8x8xf32>
    %cst_111 = arith.constant dense<0xFF800000> : vector<8xf32>
    %137 = vector.multi_reduction <maximumf>, %136, %cst_111 [1] : vector<8x8xf32> to vector<8xf32>
    %138 = vector.shape_cast %137 : vector<8xf32> to vector<8x1xf32>
    %139 = vector.broadcast %138 : vector<8x1xf32> to vector<8x8xf32>
    %140 = arith.subf %136, %139 : vector<8x8xf32>
    %141 = math.exp %140 : vector<8x8xf32>
    %cst_112 = arith.constant dense<0.000000e+00> : vector<8xf32>
    %142 = vector.multi_reduction <add>, %141, %cst_112 [1] : vector<8x8xf32> to vector<8xf32>
    %143 = vector.shape_cast %142 : vector<8xf32> to vector<8x1xf32>
    %144 = tpu.reciprocal %143 {approx = true} : vector<8x1xf32> -> vector<8x1xf32>
    %145 = vector.broadcast %144 : vector<8x1xf32> to vector<8x8xf32>
    %146 = arith.mulf %141, %145 : vector<8x8xf32>
    %147 = arith.truncf %146 : vector<8x8xf32> to vector<8x8xbf16>
    %148 = arith.truncf %127 : vector<8x8xf32> to vector<8x8xbf16>
    %cst_113 = arith.constant dense<0.000000e+00> : vector<8x8xf32>
    %149 = tpu.matmul %147, %148, %cst_113 {dimension_numbers = #tpu.dot_dimension_numbers<[1], [0], [0], [1], [0, 0, 1, 1], [], []>} : vector<8x8xbf16>, vector<8x8xbf16>, vector<8x8xf32> -> vector<8x8xf32>
    %150 = arith.truncf %149 : vector<8x8xf32> to vector<8x8xbf16>
    %c2_114 = arith.constant 2 : index
    %c0_115 = arith.constant 0 : index
    %c0_116 = arith.constant 0 : index
    %151 = vector.load %arg5[%c2_114, %c0_115, %c0_116] : memref<4x8x32xbf16, #tpu.memory_space<vmem>>, vector<1x8x32xbf16>
    %152 = vector.shape_cast %151 : vector<1x8x32xbf16> to vector<8x32xbf16>
    %cst_117 = arith.constant dense<0.000000e+00> : vector<8x32xf32>
    %153 = tpu.matmul %150, %152, %cst_117 {dimension_numbers = #tpu.dot_dimension_numbers<[1], [0], [0], [1], [0, 0, 1, 1], [], []>} : vector<8x8xbf16>, vector<8x32xbf16>, vector<8x32xf32> -> vector<8x32xf32>
    %154 = arith.addf %106, %153 : vector<8x32xf32>
    %c0_118 = arith.constant 0 : index
    %c3 = arith.constant 3 : index
    %c0_119 = arith.constant 0 : index
    %c0_120 = arith.constant 0 : index
    %155 = vector.load %arg3[%c0_118, %c3, %c0_119, %c0_120] : memref<3x4x32x8xbf16, #tpu.memory_space<vmem>>, vector<1x1x32x8xbf16>
    %156 = vector.shape_cast %155 : vector<1x1x32x8xbf16> to vector<32x8xbf16>
    %cst_121 = arith.constant dense<0.000000e+00> : vector<8x8xf32>
    %157 = tpu.matmul %6, %156, %cst_121 {dimension_numbers = #tpu.dot_dimension_numbers<[1], [0], [0], [1], [0, 0, 1, 1], [], []>} : vector<8x32xbf16>, vector<32x8xbf16>, vector<8x8xf32> -> vector<8x8xf32>
    %c0_122 = arith.constant 0 : index
    %c3_123 = arith.constant 3 : index
    %c0_124 = arith.constant 0 : index
    %c0_125 = arith.constant 0 : index
    %158 = vector.load %arg4[%c0_122, %c3_123, %c0_124, %c0_125] : memref<3x4x1x8xf32, #tpu.memory_space<vmem>>, vector<1x1x1x8xf32>
    %159 = vector.shape_cast %158 : vector<1x1x1x8xf32> to vector<1x8xf32>
    %160 = vector.broadcast %159 : vector<1x8xf32> to vector<8x8xf32>
    %161 = arith.addf %157, %160 : vector<8x8xf32>
    %c1_126 = arith.constant 1 : index
    %c3_127 = arith.constant 3 : index
    %c0_128 = arith.constant 0 : index
    %c0_129 = arith.constant 0 : index
    %162 = vector.load %arg3[%c1_126, %c3_127, %c0_128, %c0_129] : memref<3x4x32x8xbf16, #tpu.memory_space<vmem>>, vector<1x1x32x8xbf16>
    %163 = vector.shape_cast %162 : vector<1x1x32x8xbf16> to vector<32x8xbf16>
    %cst_130 = arith.constant dense<0.000000e+00> : vector<8x8xf32>
    %164 = tpu.matmul %7, %163, %cst_130 {dimension_numbers = #tpu.dot_dimension_numbers<[1], [0], [0], [1], [0, 0, 1, 1], [], []>} : vector<8x32xbf16>, vector<32x8xbf16>, vector<8x8xf32> -> vector<8x8xf32>
    %c1_131 = arith.constant 1 : index
    %c3_132 = arith.constant 3 : index
    %c0_133 = arith.constant 0 : index
    %c0_134 = arith.constant 0 : index
    %165 = vector.load %arg4[%c1_131, %c3_132, %c0_133, %c0_134] : memref<3x4x1x8xf32, #tpu.memory_space<vmem>>, vector<1x1x1x8xf32>
    %166 = vector.shape_cast %165 : vector<1x1x1x8xf32> to vector<1x8xf32>
    %167 = vector.broadcast %166 : vector<1x8xf32> to vector<8x8xf32>
    %168 = arith.addf %164, %167 : vector<8x8xf32>
    %c2_135 = arith.constant 2 : index
    %c3_136 = arith.constant 3 : index
    %c0_137 = arith.constant 0 : index
    %c0_138 = arith.constant 0 : index
    %169 = vector.load %arg3[%c2_135, %c3_136, %c0_137, %c0_138] : memref<3x4x32x8xbf16, #tpu.memory_space<vmem>>, vector<1x1x32x8xbf16>
    %170 = vector.shape_cast %169 : vector<1x1x32x8xbf16> to vector<32x8xbf16>
    %cst_139 = arith.constant dense<0.000000e+00> : vector<8x8xf32>
    %171 = tpu.matmul %7, %170, %cst_139 {dimension_numbers = #tpu.dot_dimension_numbers<[1], [0], [0], [1], [0, 0, 1, 1], [], []>} : vector<8x32xbf16>, vector<32x8xbf16>, vector<8x8xf32> -> vector<8x8xf32>
    %c2_140 = arith.constant 2 : index
    %c3_141 = arith.constant 3 : index
    %c0_142 = arith.constant 0 : index
    %c0_143 = arith.constant 0 : index
    %172 = vector.load %arg4[%c2_140, %c3_141, %c0_142, %c0_143] : memref<3x4x1x8xf32, #tpu.memory_space<vmem>>, vector<1x1x1x8xf32>
    %173 = vector.shape_cast %172 : vector<1x1x1x8xf32> to vector<1x8xf32>
    %174 = vector.broadcast %173 : vector<1x8xf32> to vector<8x8xf32>
    %175 = arith.addf %171, %174 : vector<8x8xf32>
    %176 = arith.truncf %161 : vector<8x8xf32> to vector<8x8xbf16>
    %177 = arith.truncf %168 : vector<8x8xf32> to vector<8x8xbf16>
    %cst_144 = arith.constant dense<0.000000e+00> : vector<8x8xf32>
    %178 = tpu.matmul %176, %177, %cst_144 {dimension_numbers = #tpu.dot_dimension_numbers<[1], [1], [0], [0], [0, 0, 1, 0], [], []>} : vector<8x8xbf16>, vector<8x8xbf16>, vector<8x8xf32> -> vector<8x8xf32>
    %cst_145 = arith.constant 0.353553385 : f32
    %179 = vector.broadcast %cst_145 : f32 to vector<8x8xf32>
    %180 = arith.mulf %178, %179 : vector<8x8xf32>
    %cst_146 = arith.constant -1.000000e+09 : f32
    %181 = vector.shape_cast %9 : vector<1x8xi1> to vector<1x8xi1>
    %182 = vector.broadcast %181 : vector<1x8xi1> to vector<8x8xi1>
    %183 = vector.broadcast %cst_146 : f32 to vector<8x8xf32>
    %184 = arith.select %182, %183, %180 : vector<8x8xi1>, vector<8x8xf32>
    %cst_147 = arith.constant dense<0xFF800000> : vector<8xf32>
    %185 = vector.multi_reduction <maximumf>, %184, %cst_147 [1] : vector<8x8xf32> to vector<8xf32>
    %186 = vector.shape_cast %185 : vector<8xf32> to vector<8x1xf32>
    %187 = vector.broadcast %186 : vector<8x1xf32> to vector<8x8xf32>
    %188 = arith.subf %184, %187 : vector<8x8xf32>
    %189 = math.exp %188 : vector<8x8xf32>
    %cst_148 = arith.constant dense<0.000000e+00> : vector<8xf32>
    %190 = vector.multi_reduction <add>, %189, %cst_148 [1] : vector<8x8xf32> to vector<8xf32>
    %191 = vector.shape_cast %190 : vector<8xf32> to vector<8x1xf32>
    %192 = tpu.reciprocal %191 {approx = true} : vector<8x1xf32> -> vector<8x1xf32>
    %193 = vector.broadcast %192 : vector<8x1xf32> to vector<8x8xf32>
    %194 = arith.mulf %189, %193 : vector<8x8xf32>
    %195 = arith.truncf %194 : vector<8x8xf32> to vector<8x8xbf16>
    %196 = arith.truncf %175 : vector<8x8xf32> to vector<8x8xbf16>
    %cst_149 = arith.constant dense<0.000000e+00> : vector<8x8xf32>
    %197 = tpu.matmul %195, %196, %cst_149 {dimension_numbers = #tpu.dot_dimension_numbers<[1], [0], [0], [1], [0, 0, 1, 1], [], []>} : vector<8x8xbf16>, vector<8x8xbf16>, vector<8x8xf32> -> vector<8x8xf32>
    %198 = arith.truncf %197 : vector<8x8xf32> to vector<8x8xbf16>
    %c3_150 = arith.constant 3 : index
    %c0_151 = arith.constant 0 : index
    %c0_152 = arith.constant 0 : index
    %199 = vector.load %arg5[%c3_150, %c0_151, %c0_152] : memref<4x8x32xbf16, #tpu.memory_space<vmem>>, vector<1x8x32xbf16>
    %200 = vector.shape_cast %199 : vector<1x8x32xbf16> to vector<8x32xbf16>
    %cst_153 = arith.constant dense<0.000000e+00> : vector<8x32xf32>
    %201 = tpu.matmul %198, %200, %cst_153 {dimension_numbers = #tpu.dot_dimension_numbers<[1], [0], [0], [1], [0, 0, 1, 1], [], []>} : vector<8x8xbf16>, vector<8x32xbf16>, vector<8x32xf32> -> vector<8x32xf32>
    %202 = arith.addf %154, %201 : vector<8x32xf32>
    %c0_154 = arith.constant 0 : index
    %c0_155 = arith.constant 0 : index
    %203 = vector.load %arg6[%c0_154, %c0_155] : memref<1x32xf32, #tpu.memory_space<vmem>>, vector<1x32xf32>
    %204 = vector.broadcast %203 : vector<1x32xf32> to vector<8x32xf32>
    %205 = arith.addf %202, %204 : vector<8x32xf32>
    %206 = arith.addf %205, %1 : vector<8x32xf32>
    %cst_156 = arith.constant dense<0.000000e+00> : vector<8xf32>
    %207 = vector.multi_reduction <add>, %206, %cst_156 [1] : vector<8x32xf32> to vector<8xf32>
    %208 = vector.shape_cast %207 : vector<8xf32> to vector<8x1xf32>
    %cst_157 = arith.constant 3.200000e+01 : f32
    %209 = vector.broadcast %cst_157 : f32 to vector<8x1xf32>
    %210 = arith.divf %208, %209 : vector<8x1xf32>
    %211 = vector.broadcast %210 : vector<8x1xf32> to vector<8x32xf32>
    %212 = arith.subf %206, %211 : vector<8x32xf32>
    %213 = arith.mulf %212, %212 : vector<8x32xf32>
    %cst_158 = arith.constant dense<0.000000e+00> : vector<8xf32>
    %214 = vector.multi_reduction <add>, %213, %cst_158 [1] : vector<8x32xf32> to vector<8xf32>
    %215 = vector.shape_cast %214 : vector<8xf32> to vector<8x1xf32>
    %cst_159 = arith.constant 3.200000e+01 : f32
    %216 = vector.broadcast %cst_159 : f32 to vector<8x1xf32>
    %217 = arith.divf %215, %216 : vector<8x1xf32>
    %218 = vector.broadcast %210 : vector<8x1xf32> to vector<8x32xf32>
    %219 = arith.subf %206, %218 : vector<8x32xf32>
    %cst_160 = arith.constant 9.99999974E-6 : f32
    %220 = vector.broadcast %cst_160 : f32 to vector<8x1xf32>
    %221 = arith.addf %217, %220 : vector<8x1xf32>
    %222 = math.rsqrt %221 : vector<8x1xf32>
    %223 = vector.broadcast %222 : vector<8x1xf32> to vector<8x32xf32>
    %224 = arith.mulf %219, %223 : vector<8x32xf32>
    %225 = vector.broadcast %2 : vector<1x32xf32> to vector<8x32xf32>
    %226 = arith.mulf %224, %225 : vector<8x32xf32>
    %227 = vector.broadcast %3 : vector<1x32xf32> to vector<8x32xf32>
    %228 = arith.addf %226, %227 : vector<8x32xf32>
    %229 = arith.truncf %228 : vector<8x32xf32> to vector<8x32xbf16>
    %c0_161 = arith.constant 0 : index
    %c0_162 = arith.constant 0 : index
    %230 = vector.load %arg9[%c0_161, %c0_162] : memref<32x2048xbf16, #tpu.memory_space<vmem>>, vector<32x2048xbf16>
    %cst_163 = arith.constant dense<0.000000e+00> : vector<8x2048xf32>
    %231 = tpu.matmul %229, %230, %cst_163 {dimension_numbers = #tpu.dot_dimension_numbers<[1], [0], [0], [1], [0, 0, 1, 1], [], []>} : vector<8x32xbf16>, vector<32x2048xbf16>, vector<8x2048xf32> -> vector<8x2048xf32>
    %c0_164 = arith.constant 0 : index
    %c0_165 = arith.constant 0 : index
    %232 = vector.load %arg10[%c0_164, %c0_165] : memref<1x2048xf32, #tpu.memory_space<vmem>>, vector<1x2048xf32>
    %233 = vector.broadcast %232 : vector<1x2048xf32> to vector<8x2048xf32>
    %234 = arith.addf %231, %233 : vector<8x2048xf32>
    %cst_166 = arith.constant 0.000000e+00 : f32
    %235 = vector.broadcast %cst_166 : f32 to vector<8x2048xf32>
    %236 = arith.maximumf %234, %235 : vector<8x2048xf32>
    %237 = arith.truncf %236 : vector<8x2048xf32> to vector<8x2048xbf16>
    %c0_167 = arith.constant 0 : index
    %c0_168 = arith.constant 0 : index
    %238 = vector.load %arg11[%c0_167, %c0_168] : memref<2048x32xbf16, #tpu.memory_space<vmem>>, vector<2048x32xbf16>
    %cst_169 = arith.constant dense<0.000000e+00> : vector<8x32xf32>
    %239 = tpu.matmul %237, %238, %cst_169 {dimension_numbers = #tpu.dot_dimension_numbers<[1], [0], [0], [1], [0, 0, 1, 1], [], []>} : vector<8x2048xbf16>, vector<2048x32xbf16>, vector<8x32xf32> -> vector<8x32xf32>
    %c0_170 = arith.constant 0 : index
    %c0_171 = arith.constant 0 : index
    %240 = vector.load %arg12[%c0_170, %c0_171] : memref<1x32xf32, #tpu.memory_space<vmem>>, vector<1x32xf32>
    %241 = vector.broadcast %240 : vector<1x32xf32> to vector<8x32xf32>
    %242 = arith.addf %239, %241 : vector<8x32xf32>
    %243 = arith.addf %242, %228 : vector<8x32xf32>
    %cst_172 = arith.constant dense<0.000000e+00> : vector<8xf32>
    %244 = vector.multi_reduction <add>, %243, %cst_172 [1] : vector<8x32xf32> to vector<8xf32>
    %245 = vector.shape_cast %244 : vector<8xf32> to vector<8x1xf32>
    %cst_173 = arith.constant 3.200000e+01 : f32
    %246 = vector.broadcast %cst_173 : f32 to vector<8x1xf32>
    %247 = arith.divf %245, %246 : vector<8x1xf32>
    %248 = vector.broadcast %247 : vector<8x1xf32> to vector<8x32xf32>
    %249 = arith.subf %243, %248 : vector<8x32xf32>
    %250 = arith.mulf %249, %249 : vector<8x32xf32>
    %cst_174 = arith.constant dense<0.000000e+00> : vector<8xf32>
    %251 = vector.multi_reduction <add>, %250, %cst_174 [1] : vector<8x32xf32> to vector<8xf32>
    %252 = vector.shape_cast %251 : vector<8xf32> to vector<8x1xf32>
    %cst_175 = arith.constant 3.200000e+01 : f32
    %253 = vector.broadcast %cst_175 : f32 to vector<8x1xf32>
    %254 = arith.divf %252, %253 : vector<8x1xf32>
    %255 = vector.broadcast %247 : vector<8x1xf32> to vector<8x32xf32>
    %256 = arith.subf %243, %255 : vector<8x32xf32>
    %cst_176 = arith.constant 9.99999974E-6 : f32
    %257 = vector.broadcast %cst_176 : f32 to vector<8x1xf32>
    %258 = arith.addf %254, %257 : vector<8x1xf32>
    %259 = math.rsqrt %258 : vector<8x1xf32>
    %260 = vector.broadcast %259 : vector<8x1xf32> to vector<8x32xf32>
    %261 = arith.mulf %256, %260 : vector<8x32xf32>
    %262 = vector.broadcast %2 : vector<1x32xf32> to vector<8x32xf32>
    %263 = arith.mulf %261, %262 : vector<8x32xf32>
    %264 = vector.broadcast %3 : vector<1x32xf32> to vector<8x32xf32>
    %265 = arith.addf %263, %264 : vector<8x32xf32>
    %c0_177 = arith.constant 0 : index
    %c0_178 = arith.constant 0 : index
    %c0_179 = arith.constant 0 : index
    %266 = vector.load %arg13[%c0_177, %c0_178, %c0_179] : memref<1x8x32xf32, #tpu.memory_space<vmem>>, vector<1x8x32xf32>
    %267 = vector.shape_cast %266 : vector<1x8x32xf32> to vector<8x32xf32>
    %268 = vector.shape_cast %265 : vector<8x32xf32> to vector<1x8x32xf32>
    tpu.vector_store %arg13[%c0_177, %c0_178, %c0_179], %268 {strides = array<i32>} : memref<1x8x32xf32, #tpu.memory_space<vmem>>, vector<1x8x32xf32>,
    return
  }
  func.func @transform_0(%arg0: i32) -> (i32, i32, i32) {
    %c0_i32 = arith.constant 0 : i32
    %c0_i32_0 = arith.constant 0 : i32
    %c0_i32_1 = arith.constant 0 : i32
    return %arg0, %c0_i32, %c0_i32_0 : i32, i32, i32
  }
  func.func @transform_1(%arg0: i32) -> (i32, i32, i32) {
    %c0_i32 = arith.constant 0 : i32
    %c0_i32_0 = arith.constant 0 : i32
    %c0_i32_1 = arith.constant 0 : i32
    return %arg0, %c0_i32, %c0_i32_0 : i32, i32, i32
  }
  func.func @transform_2(%arg0: i32) -> (i32, i32, i32, i32) {
    %c0_i32 = arith.constant 0 : i32
    %c0_i32_0 = arith.constant 0 : i32
    %c0_i32_1 = arith.constant 0 : i32
    %c0_i32_2 = arith.constant 0 : i32
    %c0_i32_3 = arith.constant 0 : i32
    return %c0_i32, %c0_i32_0, %c0_i32_1, %c0_i32_2 : i32, i32, i32, i32
  }
  func.func @transform_3(%arg0: i32) -> (i32, i32, i32, i32) {
    %c0_i32 = arith.constant 0 : i32
    %c0_i32_0 = arith.constant 0 : i32
    %c0_i32_1 = arith.constant 0 : i32
    %c0_i32_2 = arith.constant 0 : i32
    %c0_i32_3 = arith.constant 0 : i32
    return %c0_i32, %c0_i32_0, %c0_i32_1, %c0_i32_2 : i32, i32, i32, i32
  }
  func.func @transform_4(%arg0: i32) -> (i32, i32, i32) {
    %c0_i32 = arith.constant 0 : i32
    %c0_i32_0 = arith.constant 0 : i32
    %c0_i32_1 = arith.constant 0 : i32
    %c0_i32_2 = arith.constant 0 : i32
    return %c0_i32, %c0_i32_0, %c0_i32_1 : i32, i32, i32
  }
  func.func @transform_5(%arg0: i32) -> (i32, i32) {
    %c0_i32 = arith.constant 0 : i32
    %c0_i32_0 = arith.constant 0 : i32
    %c0_i32_1 = arith.constant 0 : i32
    return %c0_i32, %c0_i32_0 : i32, i32
  }
  func.func @transform_6(%arg0: i32) -> (i32, i32) {
    %c0_i32 = arith.constant 0 : i32
    %c0_i32_0 = arith.constant 0 : i32
    %c0_i32_1 = arith.constant 0 : i32
    return %c0_i32, %c0_i32_0 : i32, i32
  }
  func.func @transform_7(%arg0: i32) -> (i32, i32) {
    %c0_i32 = arith.constant 0 : i32
    %c0_i32_0 = arith.constant 0 : i32
    %c0_i32_1 = arith.constant 0 : i32
    return %c0_i32, %c0_i32_0 : i32, i32
  }
  func.func @transform_8(%arg0: i32) -> (i32, i32) {
    %c0_i32 = arith.constant 0 : i32
    %c0_i32_0 = arith.constant 0 : i32
    %c0_i32_1 = arith.constant 0 : i32
    return %c0_i32, %c0_i32_0 : i32, i32
  }
  func.func @transform_9(%arg0: i32) -> (i32, i32) {
    %c0_i32 = arith.constant 0 : i32
    %c0_i32_0 = arith.constant 0 : i32
    %c0_i32_1 = arith.constant 0 : i32
    return %c0_i32, %c0_i32_0 : i32, i32
  }
  func.func @transform_10(%arg0: i32) -> (i32, i32) {
    %c0_i32 = arith.constant 0 : i32
    %c0_i32_0 = arith.constant 0 : i32
    %c0_i32_1 = arith.constant 0 : i32
    return %c0_i32, %c0_i32_0 : i32, i32
  }
  func.func @transform_11(%arg0: i32) -> (i32, i32) {
    %c0_i32 = arith.constant 0 : i32
    %c0_i32_0 = arith.constant 0 : i32
    %c0_i32_1 = arith.constant 0 : i32
    return %c0_i32, %c0_i32_0 : i32, i32
  }
  func.func @transform_12(%arg0: i32) -> (i32, i32, i32) {
    %c0_i32 = arith.constant 0 : i32
    %c0_i32_0 = arith.constant 0 : i32
    %c0_i32_1 = arith.constant 0 : i32
    return %arg0, %c0_i32, %c0_i32_0 : i32, i32, i32
  }
}

</mosaic_0001>

<bundles_post_ra>
// kernel: tpu_custom_call.1
= control target key start
LH: loop header
LB: loop body
LE: loop exit
PB: predicated region body
PF: predicated region fallthrough
CT: control target
= control target key end

     0   :  { %s6044_s0 = inlined_call_operand.vmem [shape: f32[2,8,32], index: 0, kind: input, shape index: {}]   ;;  %s6045_s1 = inlined_call_operand.vmem [shape: s32[2,1,8], index: 1, kind: input, shape index: {}]   ;;  %s6046_s2 = inlined_call_operand.vmem [shape: bf16[3,4,32,8], index: 2, kind: input, shape index: {}]   ;;  %s6047_s3 = inlined_call_operand.vmem [shape: f32[3,4,1,8], index: 3, kind: input, shape index: {}]   ;;  %s6048_s4 = inlined_call_operand.vmem [shape: bf16[4,8,32], index: 4, kind: input, shape index: {}]   ;;  %s6049_s5 = inlined_call_operand.vmem [shape: f32[1,32], index: 5, kind: input, shape index: {}]   ;;  %s6050_s6 = inlined_call_operand.vmem [shape: f32[1,32], index: 6, kind: input, shape index: {}]   ;;  %s6051_s7 = inlined_call_operand.vmem [shape: f32[1,32], index: 7, kind: input, shape index: {}]   ;;  %s6052_s8 = inlined_call_operand.vmem [shape: bf16[32,2048], index: 8, kind: input, shape index: {}]   ;;  %s6053_s9 = inlined_call_operand.vmem [shape: f32[1,2048], index: 9, kind: input, shape index: {}]   ;;  %s6054_s10 = inlined_call_operand.vmem [shape: bf16[2048,32], index: 10, kind: input, shape index: {}]   ;;  %s6055_s11 = inlined_call_operand.vmem [shape: f32[1,32], index: 11, kind: input, shape index: {}]   ;;  %s6056_s12 = inlined_call_operand.hbm [shape: f32[2,8,32], index: 12, kind: output, shape index: {}]  }
   0x1   :  { %6057 = sst [smem:[#allocation5_spill]] %s6044_s0 }
   0x2   :  { %6058 = sst [smem:[#allocation6_spill]] %s6045_s1 }
   0x3   :  { %6059 = sst [smem:[#allocation7_spill]] %s6046_s2 }
   0x4   :  { %6060 = sst [smem:[#allocation8_spill]] %s6047_s3 }
   0x5   :  { %17 = vsyncpa [#allocation3], 0 }
   0x6   :  { %19 = vsyncpa [#allocation3 + $0x1], 0  ;;  %s5032_s21 = smov 0   ;;  %s5034_s22 = smov 0  }
   0x7   :  { %s5036_s23 = smov 0   ;;  %s5038_s24 = smov 0  }
   0x8 LB: > { %s5053_s25 = sadd.s32 4294967295, %s4961_s24   ;;  %s3980_s26 = sadd.s32 4294967294, %s4961_s24   ;;  %s4961_s24 = sphi %s5038_s24, %s6072_s24   ;;  %s4957_s23 = sphi %s5036_s23, %s6071_s23   ;;  %s4953_s22 = sphi %s5034_s22, %s6070_s22   ;;  %s4949_s21 = sphi %s5032_s21, %s6069_s21  }
   0x9   : > { %s5057_s27 = sadd.s32 1, %s4961_s24   ;;  %s294_s28 = sadd.s32 1, %s4957_s23 }
   0xa   : > { %s291_s29 = ssub.s32 %s4961_s24, %s5057_s27  ;;  %p304_p0 = scmp.ne.s32.totalorder %s4957_s23, %s4953_s22 }
   0xb   : > { %p292_p1 = scmp.eq.s32.totalorder %s291_s29, 0  ;;  %p305_p2 = scmp.eq.s32.totalorder %s5053_s25, 1 }
   0xc   : > { %p310_p3 = scmp.ne.s32.totalorder %s4953_s22, %s4949_s21  ;;  %p311_p4 = scmp.eq.s32.totalorder %s3980_s26, 1 }
   0xd   : > { %s5068_s30 = scalar_select %p292_p1, %s4957_s23, %s294_s28  }
   0xe   : > { %p5070_p5 = por %p305_p2, %p304_p0  ;;  %p5074_p6 = por %p311_p4, %p310_p3 }
   0xf   : > { %p3983_p7 = scmp.ge.s32.totalorder %s4961_s24, 1  ;;  %p372_p8 = scmp.lt.s32.totalorder %s4961_s24, 3 }
  0x11   : > { %p373_p9 = pnand %p3983_p7, %p372_p8 }
  0x12   : > { %s6063_s2 = sld [smem:[#allocation7_spill]] (!%p373_p9)  ;;  %p416_p10 = scmp.lt.s32.totalorder (!%p373_p9), %s5053_s25, 1 }
  0x13   : > { %376 = sbr.rel (%p373_p9) target bundleno = 4825 (0x12d9), region = 68  ;;  %s6064_s0 = sld [smem:[#allocation5_spill]] (!%p373_p9) }
  0x14   : > { %s6065_s3 = sld [smem:[#allocation8_spill]] (!%p373_p9) }
  0x15   : > { %s6066_s1 = sld [smem:[#allocation6_spill]] (!%p373_p9) }
  0x18   : > { %v4726_v0 = vld [vmem:[%s6063_s2 + $0x48] sm:$0xff]   ;;  %v4963_v1 = vmov 0.0   ;;  %v4728_v3 = vld [vmem:[%s6063_s2 + $0x40] sm:$0xff]   ;;  %vm4964_vm0 = vmmov 0   ;;  %s5100_s29 = scalar_select %p416_p10, %s5053_s25, 1  ;;  %vm453_vm1 = vcmask 261120   ;;  %v678_v24 = vlaneseq }
  0x19   : > { %4524 = vmatprep.subr.bf16.mxu1 %v4963_v1  ;;  %4516 = vmatprep.subr.bf16.mxu0 %v4963_v1  ;;  %v4727_v2 = vld [vmem:[%s6063_s2 + $0x8] sm:$0xff]   ;;  %v4729_v4 = vld [vmem:[%s6063_s2] sm:$0xff]   ;;  %vm629_vm2 = vcmask 64512   ;;  %v4965_v28 = vmov 0   ;;  %vm700_vm5 = vcmask 1043456   ;;  %v4733_v52 = vld [vmem:[%s6063_s2 + $0x18] sm:$0xff]  }
  0x1a   : > { %4525 = vmatpush3.bf16.msra.mxu1 %v4726_v0  ;;  %4528 = vmatprep.mubr.msk.bf16.mxu1 %vm4964_vm0, %v4963_v1  ;;  %s3985_s15 = sshll.u32 %s5100_s29, 3  ;;  %v3995_v7 = vld [vmem:[%s6065_s3 + $0x4] ss:$0 sm:$0xff]  ;;  %v3986_v11 = vld [vmem:[%s6065_s3] ss:$0 sm:$0xff]  ;;  %v4730_v22 = vld [vmem:[%s6063_s2 + $0x88] sm:$0xff]  }
  0x1b   : > { %4517 = vmatpush3.bf16.msra.mxu0 %v4727_v2  ;;  %4526 = vmatprep.subr.bf16.mxu1 %v4963_v1  ;;  %s5108_s18 = scalar_lea.vmem %s6064_s0, %s3985_s15  ;;  %v4731_v23 = vld [vmem:[%s6063_s2 + $0x80] sm:$0xff]   ;;  %s422_s28 = scalar_lea.vmem %s6066_s1, %s5100_s29  ;;  %v5150_v26 = vshrl.u32 %v678_v24, 7  ;;  %v4004_v44 = vld [vmem:[%s6065_s3 + $0x8] ss:$0 sm:$0xff]  ;;  %v4735_v53 = vld [vmem:[%s6063_s2 + $0x10] sm:$0xff]  }
  0x1c   : > { %4518 = vmatprep.subr.bf16.mxu0 %v4963_v1  ;;  %4520 = vmatprep.mubr.msk.bf16.mxu0 %vm4964_vm0, %v4963_v1  ;;  %v424_v5 = vld [vmem:[%s5108_s18] sm:$0xff]  ;;  %v4732_v57 = vld [vmem:[%s6063_s2 + $0x58] sm:$0xff]   ;;  %v4734_v59 = vld [vmem:[%s6063_s2 + $0x50] sm:$0xff]   ;;  %s413_s0 = sand.u32 1, %s4953_s22   ;;  %s4966_s29 = smov [#allocation2]  }
  0x1d   : > { %v5113_v6 = vpack.c.bf16 %v424_v5, %v424_v5  ;;  %v427_v25 = vld [vmem:[%s422_s28] sm:$0x1]  ;;  %v5153_v27 = vsub.s32 0, %v5150_v26  ;;  %v4024_v5 = vld [vmem:[%s6065_s3 + $0x5] ss:$0 sm:$0xff]  ;;  %s3984_s20 = sshll.u32 %s413_s0, 3 }
  0x1e   : > { %4527 = vmatpush3.bf16.msra.mxu1 %v4728_v3  ;;  %vm429_vm3 = vcmp.eq.s32.totalorder %v427_v25, 0  ;;  %s415_s26 = scalar_lea.vmem [#allocation2], %s3984_s20  ;;  %s4905_s15 = sshll.u32 %s4966_s29, 4  ;;  %s4906_s15 = int_to_ptr.vmem [resolvable:$false] %s4905_s15 }
  0x1f   : > { %4519 = vmatpush3.bf16.msra.mxu0 %v4729_v4  ;;  %4540 = vmatprep.subr.bf16.mxu1 %v4963_v1  ;;  %v677_v29 = vsel %vm429_vm3, 1, %v4965_v28  ;;  %s3912_s28 = sshll.u32 %s415_s26, 4  ;;  %s3913_s28 = int_to_ptr.vmem [resolvable:$true] %s3912_s28 }
  0x20   : > { %4532 = vmatprep.subr.bf16.mxu0 %v4963_v1  ;;  %v681_v30 = vrot.slane %v677_v29, %v5153_v27  ;;  %v4033_v29 = vld [vmem:[%s6065_s3 + $0x9] ss:$0 sm:$0xff]  ;;  %s4901_s20 = scalar_lea.vmem %s3913_s28, 128  ;;  %p4908_p0 = scmp.lt.s32.totalorder %s3913_s28, %s4906_s15 }
  0x21   : > { %4529 = vmatmul.mubr.msk.bf16.vlgmr.msra.gmra.mxu1 %vm453_vm1, %v5113_v6  ;;  %p4902_p11 = scmp.ne.s32.totalorder %s3913_s28, %s4901_s20 }
  0x22   : > { %4521 = vmatmul.mubr.msk.bf16.vlgmr.msra.gmra.mxu0 %vm453_vm1, %v5113_v6  ;;  %4542 = vmatprep.mubr.msk.bf16.mxu1 %vm4964_vm0, %v4963_v1  ;;  %vm5157_vm4 = vcmp.eq.s32.totalorder %v681_v30, 1 }
  0x23   : > { %4536 = vmatprep.mubr.msk.bf16.mxu0 %vm4964_vm0, %v4963_v1  ;;  %4533 = vmatpush3.bf16.msra.mxu0 %v4730_v22  ;;  %p4903_p12 = pnand %p4902_p11, %p5070_p5 }
  0x24   : > { %4534 = vmatprep.subr.bf16.mxu0 %v4963_v1 }
  0x25   : > { %p4904_p13 = pneg %p4903_p12 }
  0x27   : > { %4535 = vmatpush3.bf16.msra.mxu0 %v4731_v23 }
  0x28   : > { %4546 = vmatprep.subr.bf16.mxu0 %v4963_v1 }
  0x2a   : > { %4537 = vmatmul.mubr.msk.bf16.vlgmr.msra.gmra.mxu0 %vm453_vm1, %v5113_v6 }
  0x2b   : > { %4548 = vmatprep.mubr.msk.bf16.mxu0 %vm4964_vm0, %v4963_v1 }
  0xe1   : > { %v556_v8 = vpop.f32.mrf.mxu1 }
  0xe2   : > { %v491_v9 = vpop.f32.mrf.mxu0  ;;  %v557_v10 = vadd.f32 %v3995_v7, %v556_v8 }
  0xe3   : > { %v4530_v12 = vpop.f32.mrf.mxu1  ;;  %v492_v18 = vadd.f32 %v3986_v11, %v491_v9  ;;  %v4015_v9 = vld [vmem:[%s6065_s3 + $0x1] ss:$0 sm:$0xff] }
  0xe4   : > { %v4522_v13 = vpop.f32.mrf.mxu0  ;;  %v628_v14 = vpack.c.bf16 %v557_v10, %v557_v10 }
  0xe5   : > { %v559_v15 = vpop.f32.mrf.mxu1  ;;  %v627_v21 = vpack.c.bf16 %v492_v18, %v492_v18  ;;  %v4737_v18 = vld [vmem:[%s6063_s2 + $0x90] sm:$0xff]  }
  0xe6   : > { %v494_v16 = vpop.f32.mrf.mxu0  ;;  %v634_v17 = vsel %vm629_vm2, %v628_v14, 0 }
  0xe7   : > { %v4531_v19 = vpop.f32.mrf.mxu1  ;;  %4541 = vmatpush3.bf16.xpose.msra.mxu1 %v634_v17  ;;  %v4736_v17 = vld [vmem:[%s6063_s2 + $0x98] sm:$0xff]  }
  0xe8   : > { %v4523_v20 = vpop.f32.mrf.mxu0  ;;  %4552 = vmatprep.subr.bf16.mxu1 %v4963_v1 }
  0xea   : > { %v621_v45 = vpop.f32.mrf.mxu0 }
  0xeb   : > { %v622_v46 = vadd.f32 %v4004_v44, %v621_v45 }
  0xec   : > { %v4538_v47 = vpop.f32.mrf.mxu0 }
  0xed   : > { %v696_v48 = vpack.c.bf16 %v622_v46, %v622_v46  ;;  %v745_v47 = vld [vmem:[%s6048_s4] sm:$0xf] }
  0xee   : > { %4543 = vmatmul.mubr.msk.bf16.vlgmr.msra.gmra.mxu1 %vm629_vm2, %v627_v21  ;;  %v624_v49 = vpop.f32.mrf.mxu0 }
  0xef   : > { %4556 = vmatprep.mubr.msk.bf16.mxu1 %vm4964_vm0, %v4963_v1  ;;  %v702_v50 = vsel %vm700_vm5, %v696_v48, 0  ;;  %4553 = vmatpush3.bf16.msra.mxu1 %v4733_v52 }
  0xf0   : > { %v4539_v51 = vpop.f32.mrf.mxu0  ;;  %4547 = vmatpush3.bf16.msra.mxu0 %v702_v50  ;;  %4554 = vmatprep.subr.bf16.mxu1 %v4963_v1  ;;  %v1103_v50 = vsel %vm700_vm5, %v745_v47, 0 }
  0xf1   : > { %4560 = vmatprep.subr.bf16.mxu0 %v4963_v1  ;;  %v4738_v51 = vld [vmem:[%s6063_s2 + $0x68] sm:$0xff]  }
  0xf3   : > { %4555 = vmatpush3.bf16.msra.mxu1 %v4735_v53  ;;  %v4739_v53 = vld [vmem:[%s6063_s2 + $0x60] sm:$0xff]  }
  0xf4   : > { %4568 = vmatprep.subr.bf16.mxu1 %v4963_v1 }
  0xf6   : > { %4557 = vmatmul.mubr.msk.bf16.vlgmr.msra.gmra.mxu1 %vm453_vm1, %v5113_v6 }
  0xf7   : > { %4572 = vmatprep.mubr.msk.bf16.mxu1 %vm4964_vm0, %v4963_v1  ;;  %4569 = vmatpush3.bf16.msra.mxu1 %v4736_v17 }
  0xf8   : > { %4570 = vmatprep.subr.bf16.mxu1 %v4963_v1 }
  0xfb   : > { %4571 = vmatpush3.bf16.msra.mxu1 %v4737_v18 }
  0xfc   : > { %4582 = vmatprep.subr.bf16.mxu1 %v4963_v1 }
  0xfe   : > { %4573 = vmatmul.mubr.msk.bf16.vlgmr.msra.gmra.mxu1 %vm453_vm1, %v5113_v6 }
  0xff   : > { %4584 = vmatprep.mubr.msk.bf16.mxu1 %vm4964_vm0, %v4963_v1 }
 0x1ae   : > { %v670_v31 = vpop.f32.mrf.mxu1 }
 0x1af   : > { %v676_v33 = vmul.f32 0.35355338, %v670_v31 }
 0x1b0   : > { %v4544_v34 = vpop.f32.mrf.mxu1 }
 0x1b1   : > { %v683_v35 = vsel %vm5157_vm4, -1e+09, %v676_v33 }
 0x1b2   : > { %v673_v36 = vpop.f32.mrf.mxu1  ;;  %v684_v37 = vsel %vm629_vm2, %v683_v35, -inf }
 0x1b3   : > { %685 = vmax.xlane.f32.xlu0 %v684_v37 }
 0x1b4   : > { %v4545_v38 = vpop.f32.mrf.mxu1 }
 0x1b6   : > { %v805_v60 = vpop.f32.mrf.mxu1 }
 0x1b7   : > { %v806_v14 = vadd.f32 %v4015_v9, %v805_v60 }
 0x1b8   : > { %v4558_v61 = vpop.f32.mrf.mxu1 }
 0x1b9   : > { %v941_v16 = vpack.c.bf16 %v806_v14, %v806_v14 }
 0x1ba   : > { %v808_v62 = vpop.f32.mrf.mxu1 }
 0x1bc   : > { %v4559_v63 = vpop.f32.mrf.mxu1 }
 0x1be   : > { %v935_v30 = vpop.f32.mrf.mxu1 }
 0x1bf   : > { %v936_v31 = vadd.f32 %v4033_v29, %v935_v30 }
 0x1c0   : > { %v4574_v33 = vpop.f32.mrf.mxu1 }
 0x1c1   : > { %v1003_v34 = vpack.c.bf16 %v936_v31, %v936_v31 }
 0x1c3   : > { %v1008_v36 = vsel %vm700_vm5, %v1003_v34, 0 }
 0x1c4   : > { %4583 = vmatpush3.bf16.msra.mxu1 %v1008_v36 }
 0x1c5   : > { %4594 = vmatprep.subr.bf16.mxu1 %v4963_v1 }
 0x23c   : > { %v686_v39 = vpop.xlane.xlu0 %685 }
 0x23d   : > { %v687_v40 = vsub.f32 %v683_v35, %v686_v39  ;;  %v938_v35 = vpop.f32.mrf.mxu1 }
 0x23f   : > { %v688_v41 = vmul.f32 1.442695, %v687_v40  ;;  %v4575_v37 = vpop.f32.mrf.mxu1 }
 0x241   : > { %4878 = vpow2.f32 %v688_v41 }
 0x24e   : > { %v4879_v42 = vpop.eup %4878 }
 0x24f   : > { %v690_v43 = vsel %vm629_vm2, %v4879_v42, 0.0 }
 0x250   : > { %691 = vadd.xlane.f32.xlu0 %v690_v43  ;;  %v4039_v43 = vld [vmem:[%s6048_s4 + $0x4] sm:$0xf] }
 0x251   : > { %v1057_v44 = vsel %vm700_vm5, %v4039_v43, 0 }
 0x2d9   : > { %v692_v54 = vpop.xlane.xlu0 %691 }
 0x2da   : > { %4880 = vrcp.f32 %v692_v54 }
 0x2e7   : > { %v4881_v55 = vpop.eup %4880 }
 0x2e8   : > { %v694_v56 = vmul.f32 %v4881_v55, %v4879_v42  ;;  %v4740_v55 = vld [vmem:[%s6063_s2 + $0x28] sm:$0xff]  }
 0x2ea   : > { %v695_v58 = vpack.c.bf16 %v694_v56, %v694_v56 }
 0x2ec   : > { %4549 = vmatmul.mubr.msk.bf16.vlgmr.msra.gmra.mxu0 %vm629_vm2, %v695_v58 }
 0x2ed   : > { %4561 = vmatpush3.bf16.msra.mxu0 %v4732_v57  ;;  %4564 = vmatprep.mubr.msk.bf16.mxu0 %vm4964_vm0, %v4963_v1 }
 0x2ee   : > { %4562 = vmatprep.subr.bf16.mxu0 %v4963_v1 }
 0x2f1   : > { %4563 = vmatpush3.bf16.msra.mxu0 %v4734_v59  ;;  %v4741_v59 = vld [vmem:[%s6063_s2 + $0x20] sm:$0xff]  }
 0x2f2   : > { %4576 = vmatprep.subr.bf16.mxu0 %v4963_v1 }
 0x2f4   : > { %4565 = vmatmul.mubr.msk.bf16.vlgmr.msra.gmra.mxu0 %vm453_vm1, %v5113_v6 }
 0x2f5   : > { %4578 = vmatprep.mubr.msk.bf16.mxu0 %vm4964_vm0, %v4963_v1 }
 0x3ac   : > { %v5197_v0 = vpop.f32.mrf.mxu0 }
 0x3ad   : > { %v744_v52 = vpack.c.bf16 %v5197_v0, %v5197_v0 }
 0x3ae   : > { %v4550_v2 = vpop.f32.mrf.mxu0 }
 0x3af   : > { %v4056_v2 = vld [vmem:[%s6065_s3 + $0x6] ss:$0 sm:$0xff] }
 0x3b0   : > { %v741_v3 = vpop.f32.mrf.mxu0 }
 0x3b2   : > { %v4551_v4 = vpop.f32.mrf.mxu0 }
 0x3b4   : > { %v870_v7 = vpop.f32.mrf.mxu0 }
 0x3b5   : > { %v871_v8 = vadd.f32 %v4024_v5, %v870_v7 }
 0x3b6   : > { %v4566_v10 = vpop.f32.mrf.mxu0 }
 0x3b7   : > { %v942_v11 = vpack.c.bf16 %v871_v8, %v871_v8 }
 0x3b8   : > { %v873_v12 = vpop.f32.mrf.mxu0 }
 0x3b9   : > { %v947_v13 = vsel %vm629_vm2, %v942_v11, 0 }
 0x3ba   : > { %v4567_v15 = vpop.f32.mrf.mxu0  ;;  %4577 = vmatpush3.bf16.xpose.msra.mxu0 %v947_v13 }
 0x3bb   : > { %4588 = vmatprep.subr.bf16.mxu0 %v4963_v1  ;;  %v4047_v15 = vld [vmem:[%s6065_s3 + $0x2] ss:$0 sm:$0xff] }
 0x3c1   : > { %4579 = vmatmul.mubr.msk.bf16.vlgmr.msra.gmra.mxu0 %vm629_vm2, %v941_v16 }
 0x3c2   : > { %4590 = vmatprep.mubr.msk.bf16.mxu0 %vm4964_vm0, %v4963_v1  ;;  %4589 = vmatpush3.bf16.msra.mxu0 %v1057_v44 }
 0x3c3   : > { %4600 = vmatprep.subr.bf16.mxu0 %v4963_v1 }
 0x481   : > { %v983_v19 = vpop.f32.mrf.mxu0 }
 0x482   : > { %v989_v20 = vmul.f32 0.35355338, %v983_v19 }
 0x483   : > { %v4580_v21 = vpop.f32.mrf.mxu0 }
 0x484   : > { %v990_v22 = vsel %vm5157_vm4, -1e+09, %v989_v20 }
 0x485   : > { %v986_v23 = vpop.f32.mrf.mxu0  ;;  %v991_v24 = vsel %vm629_vm2, %v990_v22, -inf }
 0x486   : > { %992 = vmax.xlane.f32.xlu1 %v991_v24  ;;  %v4743_v23 = vld [vmem:[%s6063_s2 + $0xa0] sm:$0xff]  }
 0x487   : > { %v4581_v25 = vpop.f32.mrf.mxu0 }
 0x50f   : > { %v993_v38 = vpop.xlane.xlu1 %992 }
 0x510   : > { %v994_v39 = vsub.f32 %v990_v22, %v993_v38  ;;  %v4742_v22 = vld [vmem:[%s6063_s2 + $0xa8] sm:$0xff]  }
 0x512   : > { %v995_v40 = vmul.f32 1.442695, %v994_v39 }
 0x514   : > { %4882 = vpow2.f32 %v995_v40  ;;  %v4065_v40 = vld [vmem:[%s6065_s3 + $0xa] ss:$0 sm:$0xff] }
 0x521   : > { %v4883_v41 = vpop.eup %4882 }
 0x522   : > { %v997_v42 = vsel %vm629_vm2, %v4883_v41, 0.0 }
 0x523   : > { %998 = vadd.xlane.f32.xlu1 %v997_v42 }
 0x5ac   : > { %v999_v45 = vpop.xlane.xlu1 %998 }
 0x5ad   : > { %4884 = vrcp.f32 %v999_v45 }
 0x5ba   : > { %v4885_v46 = vpop.eup %4884 }
 0x5bb   : > { %v1001_v48 = vmul.f32 %v4885_v46, %v4883_v41 }
 0x5bd   : > { %v1002_v49 = vpack.c.bf16 %v1001_v48, %v1001_v48  ;;  %v4071_v48 = vld [vmem:[%s6048_s4 + $0x8] sm:$0xf] }
 0x5bf   : > { %4585 = vmatmul.mubr.msk.bf16.vlgmr.msra.gmra.mxu1 %vm629_vm2, %v1002_v49  ;;  %v1456_v49 = vsel %vm700_vm5, %v4071_v48, 0 }
 0x5c0   : > { %4595 = vmatpush3.bf16.msra.mxu1 %v1103_v50  ;;  %4596 = vmatprep.mubr.msk.bf16.mxu1 %vm4964_vm0, %v4963_v1 }
 0x5c1   : > { %4608 = vmatprep.subr.bf16.mxu1 %v4963_v1 }
 0x5c7   : > { %4597 = vmatmul.mubr.msk.bf16.vlgmr.msra.gmra.mxu1 %vm629_vm2, %v744_v52 }
 0x5c8   : > { %4609 = vmatpush3.bf16.msra.mxu1 %v4738_v51  ;;  %4612 = vmatprep.mubr.msk.bf16.mxu1 %vm4964_vm0, %v4963_v1 }
 0x5c9   : > { %4610 = vmatprep.subr.bf16.mxu1 %v4963_v1 }
 0x5cc   : > { %4611 = vmatpush3.bf16.msra.mxu1 %v4739_v53 }
 0x5cd   : > { %4624 = vmatprep.subr.bf16.mxu1 %v4963_v1 }
 0x5cf   : > { %4613 = vmatmul.mubr.msk.bf16.vlgmr.msra.gmra.mxu1 %vm453_vm1, %v5113_v6 }
 0x5d0   : > { %4626 = vmatprep.mubr.msk.bf16.mxu1 %vm4964_vm0, %v4963_v1 }
 0x67f   : > { %v1044_v54 = vpop.f32.mrf.mxu1 }
 0x680   : > { %v1050_v56 = vpack.c.bf16 %v1044_v54, %v1044_v54  ;;  %v4745_v54 = vld [vmem:[%s6063_s2 + $0x38] sm:$0xff]  }
 0x681   : > { %v4586_v57 = vpop.f32.mrf.mxu1 }
 0x682   : > { %4591 = vmatmul.mubr.msk.bf16.vlgmr.msra.gmra.mxu0 %vm629_vm2, %v1050_v56  ;;  %v4744_v57 = vld [vmem:[%s6063_s2 + $0x78] sm:$0xff]  }
 0x683   : > { %v1047_v58 = vpop.f32.mrf.mxu1  ;;  %4601 = vmatpush3.bf16.msra.mxu0 %v4740_v55  ;;  %4604 = vmatprep.mubr.msk.bf16.mxu0 %vm4964_vm0, %v4963_v1  ;;  %v4747_v55 = vld [vmem:[%s6063_s2 + $0x30] sm:$0xff]  }
 0x684   : > { %4602 = vmatprep.subr.bf16.mxu0 %v4963_v1 }
 0x685   : > { %v4587_v60 = vpop.f32.mrf.mxu1 }
 0x687   : > { %v5271_v61 = vpop.f32.mrf.mxu1  ;;  %4603 = vmatpush3.bf16.msra.mxu0 %v4741_v59 }
 0x688   : > { %4616 = vmatprep.subr.bf16.mxu0 %v4963_v1 }
 0x689   : > { %v4598_v62 = vpop.f32.mrf.mxu1 }
 0x68a   : > { %4605 = vmatmul.mubr.msk.bf16.vlgmr.msra.gmra.mxu0 %vm453_vm1, %v5113_v6  ;;  %v4746_v62 = vld [vmem:[%s6063_s2 + $0x70] sm:$0xff]  }
 0x68b   : > { %v1142_v63 = vpop.f32.mrf.mxu1  ;;  %4620 = vmatprep.mubr.msk.bf16.mxu0 %vm4964_vm0, %v4963_v1  ;;  %4617 = vmatpush3.bf16.msra.mxu0 %v4742_v22  ;;  %v4748_v22 = vld [vmem:[%s6063_s2 + $0xb8] sm:$0xff]  }
 0x68c   : > { %4618 = vmatprep.subr.bf16.mxu0 %v4963_v1 }
 0x68d   : > { %v4599_v0 = vpop.f32.mrf.mxu1 }
 0x68f   : > { %v1269_v3 = vpop.f32.mrf.mxu1  ;;  %4619 = vmatpush3.bf16.msra.mxu0 %v4743_v23  ;;  %v4749_v23 = vld [vmem:[%s6063_s2 + $0xb0] sm:$0xff]  }
 0x690   : > { %v1270_v4 = vadd.f32 %v4056_v2, %v1269_v3  ;;  %4630 = vmatprep.subr.bf16.mxu0 %v4963_v1 }
 0x691   : > { %v4614_v5 = vpop.f32.mrf.mxu1 }
 0x692   : > { %v1341_v7 = vpack.c.bf16 %v1270_v4, %v1270_v4  ;;  %4621 = vmatmul.mubr.msk.bf16.vlgmr.msra.gmra.mxu0 %vm453_vm1, %v5113_v6 }
 0x693   : > { %v1272_v8 = vpop.f32.mrf.mxu1  ;;  %4632 = vmatprep.mubr.msk.bf16.mxu0 %vm4964_vm0, %v4963_v1 }
 0x694   : > { %v1346_v9 = vsel %vm629_vm2, %v1341_v7, 0 }
 0x695   : > { %v4615_v10 = vpop.f32.mrf.mxu1  ;;  %4625 = vmatpush3.bf16.xpose.msra.mxu1 %v1346_v9 }
 0x696   : > { %4636 = vmatprep.subr.bf16.mxu1 %v4963_v1 }
 0x742   : > { %v5283_v11 = vpop.f32.mrf.mxu0 }
 0x743   : > { %v1140_v5 = vadd.f32 %v5271_v61, %v5283_v11 }
 0x744   : > { %v4592_v12 = vpop.f32.mrf.mxu0 }
 0x746   : > { %v1096_v13 = vpop.f32.mrf.mxu0 }
 0x747   : > { %v4087_v13 = vld [vmem:[%s6065_s3 + $0x7] ss:$0 sm:$0xff] }
 0x748   : > { %v4593_v14 = vpop.f32.mrf.mxu0 }
 0x74a   : > { %v1204_v16 = vpop.f32.mrf.mxu0 }
 0x74b   : > { %v1205_v17 = vadd.f32 %v4047_v15, %v1204_v16 }
 0x74c   : > { %v4606_v18 = vpop.f32.mrf.mxu0 }
 0x74d   : > { %v1340_v19 = vpack.c.bf16 %v1205_v17, %v1205_v17  ;;  %v4078_v17 = vld [vmem:[%s6065_s3 + $0x3] ss:$0 sm:$0xff] }
 0x74e   : > { %v1207_v20 = vpop.f32.mrf.mxu0 }
 0x74f   : > { %4627 = vmatmul.mubr.msk.bf16.vlgmr.msra.gmra.mxu1 %vm629_vm2, %v1340_v19 }
 0x750   : > { %v4607_v21 = vpop.f32.mrf.mxu0  ;;  %4638 = vmatprep.mubr.msk.bf16.mxu1 %vm4964_vm0, %v4963_v1  ;;  %4637 = vmatpush3.bf16.msra.mxu1 %v1456_v49 }
 0x751   : > { %4650 = vmatprep.subr.bf16.mxu1 %v4963_v1 }
 0x752   : > { %v1334_v41 = vpop.f32.mrf.mxu0 }
 0x753   : > { %v1335_v42 = vadd.f32 %v4065_v40, %v1334_v41 }
 0x754   : > { %v4622_v43 = vpop.f32.mrf.mxu0 }
 0x755   : > { %v1402_v44 = vpack.c.bf16 %v1335_v42, %v1335_v42 }
 0x756   : > { %v1337_v45 = vpop.f32.mrf.mxu0 }
 0x757   : > { %v1407_v46 = vsel %vm700_vm5, %v1402_v44, 0  ;;  %v4102_v45 = vld [vmem:[%s6048_s4 + $0xc] sm:$0xf] }
 0x758   : > { %v4623_v47 = vpop.f32.mrf.mxu0  ;;  %4631 = vmatpush3.bf16.msra.mxu0 %v1407_v46  ;;  %v1810_v46 = vsel %vm700_vm5, %v4102_v45, 0  ;;  %v1902_v45 = vld [vmem:[%s6052_s8 + $0x58] sm:$0xff] }
 0x759   : > { %4642 = vmatprep.subr.bf16.mxu0 %v4963_v1 }
 0x80f   : > { %v1382_v24 = vpop.f32.mrf.mxu1 }
 0x810   : > { %v1388_v25 = vmul.f32 0.35355338, %v1382_v24 }
 0x811   : > { %v4628_v29 = vpop.f32.mrf.mxu1 }
 0x812   : > { %v1389_v30 = vsel %vm5157_vm4, -1e+09, %v1388_v25 }
 0x813   : > { %v1385_v31 = vpop.f32.mrf.mxu1  ;;  %v1390_v33 = vsel %vm629_vm2, %v1389_v30, -inf }
 0x814   : > { %1391 = vmax.xlane.f32.xlu0 %v1390_v33 }
 0x815   : > { %v4629_v34 = vpop.f32.mrf.mxu1 }
 0x89d   : > { %v1392_v35 = vpop.xlane.xlu0 %1391 }
 0x89e   : > { %v1393_v36 = vsub.f32 %v1389_v30, %v1392_v35 }
 0x8a0   : > { %v1394_v37 = vmul.f32 1.442695, %v1393_v36 }
 0x8a2   : > { %4886 = vpow2.f32 %v1394_v37 }
 0x8af   : > { %v4887_v38 = vpop.eup %4886 }
 0x8b0   : > { %v1396_v39 = vsel %vm629_vm2, %v4887_v38, 0.0 }
 0x8b1   : > { %1397 = vadd.xlane.f32.xlu1 %v1396_v39 }
 0x93a   : > { %v1398_v50 = vpop.xlane.xlu1 %1397 }
 0x93b   : > { %4888 = vrcp.f32 %v1398_v50 }
 0x948   : > { %v4889_v51 = vpop.eup %4888 }
 0x949   : > { %v1400_v52 = vmul.f32 %v4889_v51, %v4887_v38 }
 0x94b   : > { %v1401_v53 = vpack.c.bf16 %v1400_v52, %v1400_v52 }
 0x94d   : > { %4633 = vmatmul.mubr.msk.bf16.vlgmr.msra.gmra.mxu0 %vm629_vm2, %v1401_v53 }
 0x94e   : > { %4646 = vmatprep.mubr.msk.bf16.mxu0 %vm4964_vm0, %v4963_v1  ;;  %4643 = vmatpush3.bf16.msra.mxu0 %v4745_v54 }
 0x94f   : > { %4644 = vmatprep.subr.bf16.mxu0 %v4963_v1 }
 0x952   : > { %4645 = vmatpush3.bf16.msra.mxu0 %v4747_v55 }
 0x953   : > { %4658 = vmatprep.subr.bf16.mxu0 %v4963_v1 }
 0x955   : > { %4647 = vmatmul.mubr.msk.bf16.vlgmr.msra.gmra.mxu0 %vm453_vm1, %v5113_v6 }
 0x956   : > { %4662 = vmatprep.mubr.msk.bf16.mxu0 %vm4964_vm0, %v4963_v1  ;;  %4659 = vmatpush3.bf16.msra.mxu0 %v4748_v22 }
 0x957   : > { %4660 = vmatprep.subr.bf16.mxu0 %v4963_v1 }
 0x95a   : > { %4661 = vmatpush3.bf16.msra.mxu0 %v4749_v23 }
 0x95b   : > { %4672 = vmatprep.subr.bf16.mxu0 %v4963_v1 }
 0x95d   : > { %4663 = vmatmul.mubr.msk.bf16.vlgmr.msra.gmra.mxu0 %vm453_vm1, %v5113_v6 }
 0x95e   : > { %4674 = vmatprep.mubr.msk.bf16.mxu0 %vm4964_vm0, %v4963_v1 }
 0xa0d   : > { %v1443_v56 = vpop.f32.mrf.mxu0 }
 0xa0e   : > { %v1449_v58 = vpack.c.bf16 %v1443_v56, %v1443_v56 }
 0xa0f   : > { %v4634_v59 = vpop.f32.mrf.mxu0 }
 0xa10   : > { %4639 = vmatmul.mubr.msk.bf16.vlgmr.msra.gmra.mxu1 %vm629_vm2, %v1449_v58 }
 0xa11   : > { %v1446_v60 = vpop.f32.mrf.mxu0  ;;  %4651 = vmatpush3.bf16.msra.mxu1 %v4744_v57  ;;  %4654 = vmatprep.mubr.msk.bf16.mxu1 %vm4964_vm0, %v4963_v1  ;;  %v4104_v57 = vld [vmem:[%s6049_s5] ss:$0 sm:$0xff] }
 0xa12   : > { %4652 = vmatprep.subr.bf16.mxu1 %v4963_v1 }
 0xa13   : > { %v4635_v63 = vpop.f32.mrf.mxu0 }
 0xa14   : > { %v4898_v63 = vld [vmem:[%s5108_s18] sm:$0xff]  ;;  %s4277_s18 = sshll.u32 %s5053_s25, 7  ;;  %s3899_s25 = scalar_lea.sflag [#allocation3], %s413_s0 }
 0xa15   : > { %4653 = vmatpush3.bf16.msra.mxu1 %v4746_v62  ;;  %v1558_v0 = vpop.f32.mrf.mxu0  ;;  %s3910_s2 = scalar_lea.hbm %s6056_s12, %s4277_s18 }
 0xa16   : > { %4666 = vmatprep.subr.bf16.mxu1 %v4963_v1  ;;  %v1559_v11 = vadd.f32 %v4078_v17, %v1558_v0 }
 0xa17   : > { %v4648_v2 = vpop.f32.mrf.mxu0 }
 0xa18   : > { %4655 = vmatmul.mubr.msk.bf16.vlgmr.msra.gmra.mxu1 %vm453_vm1, %v5113_v6  ;;  %v1694_v21 = vpack.c.bf16 %v1559_v11, %v1559_v11  ;;  %v1892_v11 = vld [vmem:[%s6052_s8 + $0x8] sm:$0xff] }
 0xa19   : > { %4668 = vmatprep.mubr.msk.bf16.mxu1 %vm4964_vm0, %v4963_v1  ;;  %v1561_v3 = vpop.f32.mrf.mxu0 }
 0xa1b   : > { %v4649_v4 = vpop.f32.mrf.mxu0 }
 0xa1d   : > { %v1688_v39 = vpop.f32.mrf.mxu0 }
 0xa1f   : > { %v4664_v40 = vpop.f32.mrf.mxu0 }
 0xa20   : > { %v4106_v40 = vld [vmem:[%s6051_s7] ss:$0 sm:$0xff] }
 0xa21   : > { %v1691_v42 = vpop.f32.mrf.mxu0 }
 0xa22   : > { %v1893_v42 = vld [vmem:[%s6052_s8 + $0x10] sm:$0xff] }
 0xa23   : > { %v4665_v44 = vpop.f32.mrf.mxu0 }
 0xa24   : > { %v1894_v44 = vld [vmem:[%s6052_s8 + $0x18] sm:$0xff] }
 0xad0   : > { %v1492_v7 = vpop.f32.mrf.mxu1 }
 0xad1   : > { %v5349_v8 = vadd.f32 %v1492_v7, %v1140_v5 }
 0xad2   : > { %v4640_v9 = vpop.f32.mrf.mxu1 }
 0xad4   : > { %v1495_v10 = vpop.f32.mrf.mxu1 }
 0xad6   : > { %v4641_v12 = vpop.f32.mrf.mxu1 }
 0xad7   : > { %v1915_v12 = vld [vmem:[%s6052_s8 + $0xc0] sm:$0xff] }
 0xad8   : > { %v1623_v14 = vpop.f32.mrf.mxu1 }
 0xad9   : > { %v1624_v15 = vadd.f32 %v4087_v13, %v1623_v14  ;;  %v1908_v13 = vld [vmem:[%s6052_s8 + $0x88] sm:$0xff] }
 0xada   : > { %v4656_v16 = vpop.f32.mrf.mxu1 }
 0xadb   : > { %v1695_v18 = vpack.c.bf16 %v1624_v15, %v1624_v15  ;;  %v1916_v15 = vld [vmem:[%s6052_s8 + $0xc8] sm:$0xff] }
 0xadc   : > { %v1626_v19 = vpop.f32.mrf.mxu1  ;;  %v4125_v17 = vcombine.low %v1908_v13, %v1916_v15 }
 0xadd   : > { %v1700_v61 = vsel %vm629_vm2, %v1695_v18, 0  ;;  %v4126_v18 = vcombine.high %v1908_v13, %v1916_v15  ;;  %v1891_v19 = vld [vmem:[%s6052_s8] sm:$0xff]  ;;  %v1905_v15 = vld [vmem:[%s6052_s8 + $0x70] sm:$0xff] }
 0xade   : > { %v4657_v20 = vpop.f32.mrf.mxu1  ;;  %4667 = vmatpush3.bf16.xpose.msra.mxu1 %v1700_v61  ;;  %v1899_v61 = vld [vmem:[%s6052_s8 + $0x40] sm:$0xff] }
 0xadf   : > { %4678 = vmatprep.subr.bf16.mxu1 %v4963_v1  ;;  %v4108_v20 = vcombine.high %v1891_v19, %v1899_v61  ;;  %v4107_v22 = vcombine.low %v1891_v19, %v1899_v61 }
 0xae5   : > { %4669 = vmatmul.mubr.msk.bf16.vlgmr.msra.gmra.mxu1 %vm629_vm2, %v1694_v21  ;;  %v1900_v21 = vld [vmem:[%s6052_s8 + $0x48] sm:$0xff] }
 0xae6   : > { %4680 = vmatprep.mubr.msk.bf16.mxu1 %vm4964_vm0, %v4963_v1  ;;  %v4096_v1 = vld [vmem:[%s6065_s3 + $0xb] ss:$0 sm:$0xff]  ;;  %4679 = vmatpush3.bf16.msra.mxu1 %v1810_v46  ;;  %v4109_v23 = vcombine.low %v1892_v11, %v1900_v21  ;;  %s4907_s3 = scalar_lea.vmem %s4906_s15, 256 }
 0xae7   : > { %v1689_v32 = vadd.f32 %v4096_v1, %v1688_v39  ;;  %2223 = vmatprep.subr.bf16.mxu1 %v4126_v18  ;;  %v4105_v39 = vld [vmem:[%s6050_s6] ss:$0 sm:$0xff]  ;;  %p4909_p1 = scmp.lt.s32.totalorder %s4907_s3, %s4901_s20 }
 0xae9   : > { %v1756_v41 = vpack.c.bf16 %v1689_v32, %v1689_v32  ;;  %p4910_p2 = por %p4909_p1, %p4908_p0 }
 0xaeb   : > { %v1761_v43 = vsel %vm700_vm5, %v1756_v41, 0  ;;  %p4911_p3 = pnand %p4910_p2, %p4904_p13 }
 0xaec   : > { %4673 = vmatpush3.bf16.msra.mxu0 %v1761_v43  ;;  %v1901_v43 = vld [vmem:[%s6052_s8 + $0x50] sm:$0xff] }
 0xba5   : > { %v1736_v24 = vpop.f32.mrf.mxu1 }
 0xba6   : > { %v1742_v25 = vmul.f32 0.35355338, %v1736_v24  ;;  %v4110_v24 = vcombine.high %v1892_v11, %v1900_v21 }
 0xba7   : > { %v4670_v29 = vpop.f32.mrf.mxu1 }
 0xba8   : > { %v1743_v30 = vsel %vm5157_vm4, -1e+09, %v1742_v25  ;;  %v1909_v25 = vld [vmem:[%s6052_s8 + $0x90] sm:$0xff] }
 0xba9   : > { %v1739_v31 = vpop.f32.mrf.mxu1  ;;  %v1744_v33 = vsel %vm629_vm2, %v1743_v30, -inf  ;;  %v1917_v29 = vld [vmem:[%s6052_s8 + $0xd0] sm:$0xff] }
 0xbaa   : > { %1745 = vmax.xlane.f32.xlu0 %v1744_v33  ;;  %v4128_v31 = vcombine.high %v1909_v25, %v1917_v29  ;;  %v1918_v33 = vld [vmem:[%s6052_s8 + $0xd8] sm:$0xff] }
 0xbab   : > { %v4671_v34 = vpop.f32.mrf.mxu1 }
 0xbac   : > { %v4127_v34 = vcombine.low %v1909_v25, %v1917_v29  ;;  %v4753_v25 = vld [vmem:[%s6054_s10 + $0xb8] sm:$0xff]   ;;  %v4754_v29 = vld [vmem:[%s6054_s10 + $0x70] sm:$0xff]  }
 0xc33   : > { %v1746_v35 = vpop.xlane.xlu0 %1745 }
 0xc34   : > { %v1747_v36 = vsub.f32 %v1743_v30, %v1746_v35  ;;  %v1910_v30 = vld [vmem:[%s6052_s8 + $0x98] sm:$0xff] }
 0xc35   : > { %v4129_v35 = vcombine.low %v1910_v30, %v1918_v33 }
 0xc36   : > { %v1748_v37 = vmul.f32 1.442695, %v1747_v36  ;;  %v4130_v36 = vcombine.high %v1910_v30, %v1918_v33  ;;  %v4756_v30 = vld [vmem:[%s6054_s10 + $0x30] sm:$0xff]   ;;  %v4758_v33 = vld [vmem:[%s6054_s10 + $0x68] sm:$0xff]  }
 0xc38   : > { %4890 = vpow2.f32 %v1748_v37 }
 0xc45   : > { %v4891_v38 = vpop.eup %4890 }
 0xc46   : > { %v1750_v6 = vsel %vm629_vm2, %v4891_v38, 0.0 }
 0xc47   : > { %1751 = vadd.xlane.f32.xlu1 %v1750_v6 }
 0xcd0   : > { %v1752_v47 = vpop.xlane.xlu1 %1751 }
 0xcd1   : > { %4892 = vrcp.f32 %v1752_v47 }
 0xcde   : > { %v4893_v48 = vpop.eup %4892 }
 0xcdf   : > { %v1754_v49 = vmul.f32 %v4893_v48, %v4891_v38  ;;  %v4112_v48 = vcombine.high %v1893_v42, %v1901_v43 }
 0xce1   : > { %v1755_v50 = vpack.c.bf16 %v1754_v49, %v1754_v49  ;;  %v4114_v49 = vcombine.high %v1894_v44, %v1902_v45 }
 0xce3   : > { %4675 = vmatmul.mubr.msk.bf16.vlgmr.msra.gmra.mxu0 %vm629_vm2, %v1755_v50  ;;  %v1911_v50 = vld [vmem:[%s6052_s8 + $0xa0] sm:$0xff] }
 0xce4   : > { %2202 = vmatprep.mubr.bf16.mxu0 %v4965_v28 }
 0xda3   : > { %v1797_v51 = vpop.f32.mrf.mxu0 }
 0xda4   : > { %v1803_v52 = vpack.c.bf16 %v1797_v51, %v1797_v51  ;;  %v1919_v51 = vld [vmem:[%s6052_s8 + $0xe0] sm:$0xff] }
 0xda5   : > { %v4676_v53 = vpop.f32.mrf.mxu0 }
 0xda6   : > { %4681 = vmatmul.mubr.msk.bf16.vlgmr.msra.gmra.mxu1 %vm629_vm2, %v1803_v52  ;;  %v1912_v52 = vld [vmem:[%s6052_s8 + $0xa8] sm:$0xff] }
 0xda7   : > { %v1800_v54 = vpop.f32.mrf.mxu0  ;;  %2243 = vmatprep.mubr.bf16.mxu1 %v4965_v28  ;;  %2224 = vmatpush1.bf16.msra.mxu1 %v4125_v17  ;;  %v1920_v53 = vld [vmem:[%s6052_s8 + $0xe8] sm:$0xff]  ;;  %v1906_v17 = vld [vmem:[%s6052_s8 + $0x78] sm:$0xff] }
 0xda8   : > { %2225 = vmatprep.subr.bf16.mxu1 %v4110_v24  ;;  %v4111_v54 = vcombine.low %v1893_v42, %v1901_v43  ;;  %v4752_v24 = vld [vmem:[%s6054_s10 + $0x38] sm:$0xff]   ;;  %v4770_v42 = vld [vmem:[%s6054_s10 + $0x50] sm:$0xff]  }
 0xda9   : > { %v4677_v55 = vpop.f32.mrf.mxu0  ;;  %v4771_v43 = vld [vmem:[%s6054_s10 + $0xd0] sm:$0xff]  }
 0xdaa   : > { %v4113_v55 = vcombine.low %v1894_v44, %v1902_v45  ;;  %v4772_v44 = vld [vmem:[%s6054_s10 + $0x10] sm:$0xff]  }
 0xdab   : > { %2226 = vmatpush1.bf16.msra.mxu1 %v4109_v23  ;;  %v4751_v23 = vld [vmem:[%s6054_s10 + $0xf8] sm:$0xff]   ;;  %v4773_v45 = vld [vmem:[%s6054_s10 + $0x90] sm:$0xff]  }
 0xdac   : > { %2305 = vmatprep.subr.bf16.mxu1 %v4130_v36  ;;  %v4761_v36 = vld [vmem:[%s6054_s10 + $0xa8] sm:$0xff]  }
 0xe66   : > { %v1846_v56 = vpop.f32.mrf.mxu1 }
 0xe67   : > { %v1852_v58 = vadd.f32 %v1846_v56, %v5349_v8  ;;  %v1907_v8 = vld [vmem:[%s6052_s8 + $0x80] sm:$0xff]  ;;  %v4132_v56 = vcombine.high %v1911_v50, %v1919_v51 }
 0xe68   : > { %v4682_v59 = vpop.f32.mrf.mxu1  ;;  %v4124_v14 = vcombine.high %v1907_v8, %v1915_v12  ;;  %v4123_v16 = vcombine.low %v1907_v8, %v1915_v12 }
 0xe69   : > { %v1860_v60 = vadd.f32 %v4104_v57, %v1852_v58  ;;  %v4134_v57 = vcombine.high %v1912_v52, %v1920_v53  ;;  %v1895_v58 = vld [vmem:[%s6052_s8 + $0x20] sm:$0xff] }
 0xe6a   : > { %v1849_v62 = vpop.f32.mrf.mxu1  ;;  %2182 = vmatprep.subr.bf16.mxu0 %v4124_v14  ;;  %v1903_v59 = vld [vmem:[%s6052_s8 + $0x60] sm:$0xff]  ;;  %v1897_v14 = vld [vmem:[%s6052_s8 + $0x30] sm:$0xff] }
 0xe6b   : > { %v1861_v0 = vadd.f32 %v4898_v63, %v1860_v60  ;;  %2183 = vmatpush1.bf16.msra.mxu0 %v4123_v16  ;;  %v1896_v60 = vld [vmem:[%s6052_s8 + $0x28] sm:$0xff]  ;;  %v4131_v63 = vcombine.low %v1911_v50, %v1919_v51  ;;  %v1898_v16 = vld [vmem:[%s6052_s8 + $0x38] sm:$0xff]  ;;  %v4120_v61 = vcombine.high %v1897_v14, %v1905_v15  ;;  %v4778_v51 = vld [vmem:[%s6054_s10 + $0x40] sm:$0xff]  }
 0xe6c   : > { %v4683_v2 = vpop.f32.mrf.mxu1  ;;  %2184 = vmatprep.subr.bf16.mxu0 %v4108_v20  ;;  %v1904_v62 = vld [vmem:[%s6052_s8 + $0x68] sm:$0xff]  ;;  %v4122_v11 = vcombine.high %v1898_v16, %v1906_v17  ;;  %v4119_v20 = vcombine.low %v1897_v14, %v1905_v15  ;;  %v4121_v21 = vcombine.low %v1898_v16, %v1906_v17  ;;  %v1949_v16 = vsub.s32 5, %v5150_v26 }
 0xe6d   : > { %v1862_v3 = vsel %vm453_vm1, %v1861_v0, 0.0  ;;  %v4116_v2 = vcombine.high %v1895_v58, %v1903_v59  ;;  %v4117_v8 = vcombine.low %v1896_v60, %v1904_v62  ;;  %v4777_v50 = vld [vmem:[%s6054_s10 + $0x88] sm:$0xff]   ;;  %v1957_v17 = vsub.s32 7, %v5150_v26 }
 0xe6e   : > { %1863 = vadd.xlane.f32.xlu0 %v1862_v3  ;;  %v4118_v3 = vcombine.high %v1896_v60, %v1904_v62  ;;  %v1937_v60 = vsub.s32 2, %v5150_v26  ;;  %v5644_v62 = vld [vmem:[%s6053_s9] sm:$0xff] }
 0xe6f   : > { %2185 = vmatpush1.bf16.msra.mxu0 %v4107_v22  ;;  %v4750_v22 = vld [vmem:[%s6054_s10 + $0x78] sm:$0xff]  }
 0xe70   : > { %2264 = vmatprep.subr.bf16.mxu0 %v4128_v31  ;;  %v4757_v31 = vld [vmem:[%s6054_s10 + $0xb0] sm:$0xff]  }
 0xef7   : > { %v1864_v4 = vpop.xlane.xlu0 %1863 }
 0xef8   : > { %v1866_v5 = vmul.f32 0.03125, %v1864_v4  ;;  %v1913_v4 = vld [vmem:[%s6052_s8 + $0xb0] sm:$0xff] }
 0xefa   : > { %v1867_v7 = vsub.f32 %v1861_v0, %v1866_v5  ;;  %v4133_v0 = vcombine.low %v1912_v52, %v1920_v53  ;;  %v1921_v5 = vld [vmem:[%s6052_s8 + $0xf0] sm:$0xff]  ;;  %v4779_v52 = vld [vmem:[%s6054_s10 + $0xc0] sm:$0xff]  }
 0xefb   : > { %v4136_v12 = vcombine.high %v1913_v4, %v1921_v5  ;;  %v4135_v18 = vcombine.low %v1913_v4, %v1921_v5  ;;  %v4780_v53 = vld [vmem:[%s6054_s10] sm:$0xff]  }
 0xefc   : > { %v1868_v9 = vmul.f32 %v1867_v7, %v1867_v7 }
 0xefe   : > { %v1869_v10 = vsel %vm453_vm1, %v1868_v9, 0.0  ;;  %v1922_v9 = vld [vmem:[%s6052_s8 + $0xf8] sm:$0xff] }
 0xeff   : > { %1870 = vadd.xlane.f32.xlu1 %v1869_v10  ;;  %v4115_v10 = vcombine.low %v1895_v58, %v1903_v59  ;;  %v5633_v58 = vld [vmem:[%s6053_s9 + $0x8] sm:$0xff] }
 0xf88   : > { %v1871_v37 = vpop.xlane.xlu1 %1870 }
 0xf89   : > { %v1872_v38 = vmul.f32 0.03125, %v1871_v37  ;;  %v4762_v37 = vld [vmem:[%s6054_s10 + $0x60] sm:$0xff]  }
 0xf8b   : > { %v1873_v6 = vadd.f32 1e-05, %v1872_v38  ;;  %v4763_v38 = vld [vmem:[%s6054_s10 + $0xe0] sm:$0xff]  }
 0xf8d   : > { %4894 = vrsqrt.f32 %v1873_v6  ;;  %v4764_v6 = vld [vmem:[%s6054_s10 + $0x20] sm:$0xff]  }
 0xf9a   : > { %v4895_v1 = vpop.eup %4894 }
 0xf9b   : > { %v1875_v32 = vmul.f32 %v4895_v1, %v1867_v7  ;;  %v1914_v7 = vld [vmem:[%s6052_s8 + $0xb8] sm:$0xff]  ;;  %v4765_v1 = vld [vmem:[%s6054_s10 + $0xa0] sm:$0xff]  }
 0xf9c   : > { %v4138_v13 = vcombine.high %v1914_v7, %v1922_v9  ;;  %v4137_v19 = vcombine.low %v1914_v7, %v1922_v9 }
 0xf9d   : > { %v1882_v41 = vmul.f32 %v4105_v39, %v1875_v32  ;;  %v4766_v39 = vld [vmem:[%s6054_s10 + $0x58] sm:$0xff]  }
 0xf9e   : > { %v4767_v32 = vld [vmem:[%s6054_s10 + $0xd8] sm:$0xff]  }
 0xf9f   : > { %v5451_v46 = vadd.f32 %v4106_v40, %v1882_v41  ;;  %v4768_v40 = vld [vmem:[%s6054_s10 + $0x18] sm:$0xff]  }
 0xfa0   : > { %v4769_v41 = vld [vmem:[%s6054_s10 + $0x98] sm:$0xff]  }
 0xfa1   : > { %v5455_v47 = vpack.c.bf16 %v5451_v46, %v5451_v46 }
 0xfa3   : > { %4139 = vmatmul.mubr.msk.bf16.vlgmr.msra.gmra.mxu0 %vm453_vm1, %v5455_v47  ;;  %4140 = vmatmul.mubr.msk.bf16.vlgmr.msra.gmra.mxu1 %vm453_vm1, %v5455_v47 }
 0xfa4   : > { %2265 = vmatpush1.bf16.msra.mxu0 %v4127_v34  ;;  %2306 = vmatpush1.bf16.msra.mxu1 %v4129_v35  ;;  %v4759_v34 = vld [vmem:[%s6054_s10 + $0xe8] sm:$0xff]  }
 0xfa5   : > { %2266 = vmatprep.subr.bf16.mxu0 %v4112_v48  ;;  %2307 = vmatprep.subr.bf16.mxu1 %v4114_v49  ;;  %v4760_v35 = vld [vmem:[%s6054_s10 + $0x28] sm:$0xff]  }
 0xfa6   : > { %2284 = vmatprep.mubr.bf16.mxu0 %v4965_v28  ;;  %2325 = vmatprep.mubr.bf16.mxu1 %v4965_v28  ;;  %v4775_v48 = vld [vmem:[%s6054_s10 + $0xc8] sm:$0xff]  }
 0xfa7   : > { %v4776_v49 = vld [vmem:[%s6054_s10 + $0x8] sm:$0xff]  }
 0xfa8   : > { %2267 = vmatpush1.bf16.msra.mxu0 %v4111_v54  ;;  %2308 = vmatpush1.bf16.msra.mxu1 %v4113_v55  ;;  %v4781_v54 = vld [vmem:[%s6054_s10 + $0x80] sm:$0xff]   ;;  %v4782_v55 = vld [vmem:[%s6054_s10 + $0x178] sm:$0xff]  }
 0xfa9   : > { %2346 = vmatprep.subr.bf16.mxu0 %v4132_v56  ;;  %2387 = vmatprep.subr.bf16.mxu1 %v4134_v57  ;;  %v4783_v56 = vld [vmem:[%s6054_s10 + $0x1f8] sm:$0xff]   ;;  %v1953_v57 = vsub.s32 6, %v5150_v26 }
 0xfab   : > { %4141 = vmatmul.mubr.msk.bf16.vlgmr.msra.gmra.mxu0 %vm453_vm1, %v5455_v47  ;;  %4142 = vmatmul.mubr.msk.bf16.vlgmr.msra.gmra.mxu1 %vm453_vm1, %v5455_v47  ;;  %v5638_v59 = vrot.slane %v5633_v58, %v1953_v57 }
 0xfac   : > { %2347 = vmatpush1.bf16.msra.mxu0 %v4131_v63  ;;  %2388 = vmatpush1.bf16.msra.mxu1 %v4133_v0  ;;  %v1933_v63 = vsub.s32 1, %v5150_v26  ;;  %v1941_v0 = vsub.s32 3, %v5150_v26 }
 0xfad   : > { %2348 = vmatprep.subr.bf16.mxu0 %v4116_v2  ;;  %2389 = vmatprep.subr.bf16.mxu1 %v4118_v3  ;;  %v1930_v2 = vrot.slane %v5644_v62, %v5153_v27  ;;  %v1938_v3 = vrot.slane %v5644_v62, %v1937_v60 }
 0xfae   : > { %2366 = vmatprep.mubr.bf16.mxu0 %v4965_v28  ;;  %2407 = vmatprep.mubr.bf16.mxu1 %v4965_v28  ;;  %v1934_v4 = vrot.slane %v5644_v62, %v1933_v63  ;;  %v1942_v5 = vrot.slane %v5644_v62, %v1941_v0 }
 0xfb0   : > { %2349 = vmatpush1.bf16.msra.mxu0 %v4115_v10  ;;  %2390 = vmatpush1.bf16.msra.mxu1 %v4117_v8 }
 0xfb1   : > { %2428 = vmatprep.subr.bf16.mxu0 %v4136_v12  ;;  %2469 = vmatprep.subr.bf16.mxu1 %v4138_v13 }
 0xfb3   : > { %4143 = vmatmul.mubr.msk.bf16.vlgmr.msra.gmra.mxu0 %vm453_vm1, %v5455_v47  ;;  %4144 = vmatmul.mubr.msk.bf16.vlgmr.msra.gmra.mxu1 %vm453_vm1, %v5455_v47 }
 0xfb4   : > { %2429 = vmatpush1.bf16.msra.mxu0 %v4135_v18  ;;  %2470 = vmatpush1.bf16.msra.mxu1 %v4137_v19 }
 0xfb5   : > { %2430 = vmatprep.subr.bf16.mxu0 %v4120_v61  ;;  %2471 = vmatprep.subr.bf16.mxu1 %v4122_v11 }
 0xfb6   : > { %2448 = vmatprep.mubr.bf16.mxu0 %v4965_v28  ;;  %2489 = vmatprep.mubr.bf16.mxu1 %v4965_v28  ;;  %v4755_v28 = vld [vmem:[%s6054_s10 + $0xf0] sm:$0xff]  }
 0xfb8   : > { %2431 = vmatpush1.bf16.msra.mxu0 %v4119_v20  ;;  %2472 = vmatpush1.bf16.msra.mxu1 %v4121_v21 }
 0xfb9   : > { %4340 = vmatprep.subr.bf16.mxu0 %v4750_v22  ;;  %4362 = vmatprep.subr.bf16.mxu1 %v4751_v23 }
 0xfbb   : > { %4145 = vmatmul.mubr.msk.bf16.vlgmr.msra.gmra.mxu0 %vm453_vm1, %v5455_v47  ;;  %4146 = vmatmul.mubr.msk.bf16.vlgmr.msra.gmra.mxu1 %vm453_vm1, %v5455_v47  ;;  %v4774_v47 = vld [vmem:[%s6054_s10 + $0x48] sm:$0xff]  }
 0xfbc   : > { %4341 = vmatpush3.bf16.msra.mxu0 %v4752_v24  ;;  %4363 = vmatpush3.bf16.msra.mxu1 %v4753_v25 }
 0xfbd   : > { %4342 = vmatprep.subr.bf16.mxu0 %v4754_v29  ;;  %4364 = vmatprep.subr.bf16.mxu1 %v4755_v28  ;;  %v1950_v29 = vrot.slane %v5644_v62, %v1949_v16  ;;  %v1958_v28 = vrot.slane %v5644_v62, %v1957_v17 }
 0xfc0   : > { %4343 = vmatpush3.bf16.msra.mxu0 %v4756_v30  ;;  %4365 = vmatpush3.bf16.msra.mxu1 %v4757_v31  ;;  %v4784_v30 = vld [vmem:[%s6054_s10 + $0x138] sm:$0xff]  }
 0xfc1   : > { %4344 = vmatprep.subr.bf16.mxu0 %v4758_v33  ;;  %4366 = vmatprep.subr.bf16.mxu1 %v4759_v34  ;;  %v4785_v31 = vld [vmem:[%s6054_s10 + $0x1b8] sm:$0xff]  }
 0xfc4   : > { %4345 = vmatpush3.bf16.msra.mxu0 %v4760_v35  ;;  %4367 = vmatpush3.bf16.msra.mxu1 %v4761_v36 }
 0xfc5   : > { %4346 = vmatprep.subr.bf16.mxu0 %v4762_v37  ;;  %4368 = vmatprep.subr.bf16.mxu1 %v4763_v38  ;;  %v4786_v37 = vld [vmem:[%s6054_s10 + $0x170] sm:$0xff]  }
 0xfc6   : > { %v4787_v38 = vld [vmem:[%s6054_s10 + $0x1f0] sm:$0xff]  }
 0xfc8   : > { %4347 = vmatpush3.bf16.msra.mxu0 %v4764_v6  ;;  %4369 = vmatpush3.bf16.msra.mxu1 %v4765_v1 }
 0xfc9   : > { %4348 = vmatprep.subr.bf16.mxu0 %v4766_v39  ;;  %4370 = vmatprep.subr.bf16.mxu1 %v4767_v32 }
 0xfcc   : > { %4349 = vmatpush3.bf16.msra.mxu0 %v4768_v40  ;;  %4371 = vmatpush3.bf16.msra.mxu1 %v4769_v41  ;;  %v4788_v40 = vld [vmem:[%s6054_s10 + $0x130] sm:$0xff]  }
 0xfcd   : > { %4350 = vmatprep.subr.bf16.mxu0 %v4770_v42  ;;  %4372 = vmatprep.subr.bf16.mxu1 %v4771_v43  ;;  %v4789_v41 = vld [vmem:[%s6054_s10 + $0x1b0] sm:$0xff]  }
 0xfd0   : > { %4351 = vmatpush3.bf16.msra.mxu0 %v4772_v44  ;;  %4373 = vmatpush3.bf16.msra.mxu1 %v4773_v45  ;;  %v4790_v44 = vld [vmem:[%s6054_s10 + $0x168] sm:$0xff]  }
 0xfd1   : > { %4352 = vmatprep.subr.bf16.mxu0 %v4774_v47  ;;  %4374 = vmatprep.subr.bf16.mxu1 %v4775_v48  ;;  %v4791_v45 = vld [vmem:[%s6054_s10 + $0x1e8] sm:$0xff]  }
 0xfd4   : > { %4353 = vmatpush3.bf16.msra.mxu0 %v4776_v49  ;;  %4375 = vmatpush3.bf16.msra.mxu1 %v4777_v50 }
 0xfd5   : > { %4354 = vmatprep.subr.bf16.mxu0 %v4778_v51  ;;  %4376 = vmatprep.subr.bf16.mxu1 %v4779_v52 }
 0xfd8   : > { %4355 = vmatpush3.bf16.msra.mxu0 %v4780_v53  ;;  %4377 = vmatpush3.bf16.msra.mxu1 %v4781_v54  ;;  %v4792_v53 = vld [vmem:[%s6054_s10 + $0x128] sm:$0xff]  }
 0xfd9   : > { %4384 = vmatprep.subr.bf16.mxu0 %v4782_v55  ;;  %4406 = vmatprep.subr.bf16.mxu1 %v4783_v56  ;;  %v4793_v54 = vld [vmem:[%s6054_s10 + $0x1a8] sm:$0xff]  }
0x1063   : > { %v2204_v7 = vpop.f32.mrf.mxu0  ;;  %v2245_v9 = vpop.f32.mrf.mxu1 }
0x1064   : > { %v2205_v10 = vadd.f32 %v2204_v7, %v1930_v2  ;;  %v2246_v8 = vadd.f32 %v2245_v9, %v1938_v3  ;;  %v4794_v2 = vld [vmem:[%s6054_s10 + $0x160] sm:$0xff]   ;;  %v1945_v7 = vsub.s32 4, %v5150_v26 }
0x1065   : > { %v2206_v12 = vpop.f32.mrf.mxu0  ;;  %v2247_v13 = vpop.f32.mrf.mxu1  ;;  %v4795_v3 = vld [vmem:[%s6054_s10 + $0x1e0] sm:$0xff]  }
0x1066   : > { %v2207_v14 = vadd.f32 %v2206_v12, %v1934_v4  ;;  %v2248_v15 = vadd.f32 %v2247_v13, %v1942_v5  ;;  %v2498_v18 = vmax.f32 %v2205_v10, 0.0  ;;  %v2500_v19 = vmax.f32 %v2246_v8, 0.0  ;;  %v4796_v9 = vld [vmem:[%s6054_s10 + $0x120] sm:$0xff]   ;;  %v4798_v13 = vld [vmem:[%s6054_s10 + $0x158] sm:$0xff]  }
0x1067   : > { %v2208_v61 = vpop.f32.mrf.mxu0  ;;  %v2249_v11 = vpop.f32.mrf.mxu1  ;;  %v4797_v10 = vld [vmem:[%s6054_s10 + $0x1a0] sm:$0xff]  }
0x1068   : > { %v2499_v20 = vmax.f32 %v2207_v14, 0.0  ;;  %v2501_v21 = vmax.f32 %v2248_v15, 0.0  ;;  %v2514_v33 = vpack.c.bf16 %v2498_v18, %v2498_v18  ;;  %v2516_v34 = vpack.c.bf16 %v2500_v19, %v2500_v19  ;;  %v4799_v14 = vld [vmem:[%s6054_s10 + $0x1d8] sm:$0xff]  }
0x1069   : > { %v2209_v22 = vpop.f32.mrf.mxu0  ;;  %v2250_v23 = vpop.f32.mrf.mxu1  ;;  %v1978_v15 = vrot.slane %v5633_v58, %v1945_v7  ;;  %v4800_v61 = vld [vmem:[%s6054_s10 + $0x118] sm:$0xff]  }
0x106a   : > { %v2515_v24 = vpack.c.bf16 %v2499_v20, %v2499_v20  ;;  %v2517_v25 = vpack.c.bf16 %v2501_v21, %v2501_v21  ;;  %v4801_v11 = vld [vmem:[%s6054_s10 + $0x198] sm:$0xff]   ;;  %v4802_v22 = vld [vmem:[%s6054_s10 + $0x150] sm:$0xff]  }
0x106b   : > { %v5673_v35 = vpop.f32.mrf.mxu0  ;;  %v5675_v36 = vpop.f32.mrf.mxu1  ;;  %v4803_v23 = vld [vmem:[%s6054_s10 + $0x1d0] sm:$0xff]  }
0x106c   : > { %3593 = vmatprep.mubr.bf16.mxu0 %v2515_v24  ;;  %3633 = vmatprep.mubr.bf16.mxu1 %v2517_v25 }
0x106d   : > { %v2288_v6 = vpop.f32.mrf.mxu0  ;;  %v2329_v1 = vpop.f32.mrf.mxu1  ;;  %3594 = vmatmul.mubr.bf16.vlgmr.msra.gmra.mxu0 %v2514_v33  ;;  %3634 = vmatmul.mubr.bf16.vlgmr.msra.gmra.mxu1 %v2516_v34  ;;  %v1946_v33 = vrot.slane %v5644_v62, %v1945_v7 }
0x106e   : > { %v2289_v39 = vadd.f32 %v2288_v6, %v1950_v29  ;;  %v2330_v32 = vadd.f32 %v2329_v1, %v1958_v28  ;;  %4385 = vmatpush3.bf16.msra.mxu0 %v4784_v30  ;;  %4407 = vmatpush3.bf16.msra.mxu1 %v4785_v31  ;;  %v4804_v30 = vld [vmem:[%s6054_s10 + $0x110] sm:$0xff]   ;;  %v4807_v6 = vld [vmem:[%s6054_s10 + $0x1c8] sm:$0xff]   ;;  %v1966_v1 = vrot.slane %v5633_v58, %v1933_v63 }
0x106f   : > { %v2290_v42 = vpop.f32.mrf.mxu0  ;;  %v2331_v43 = vpop.f32.mrf.mxu1  ;;  %4386 = vmatprep.subr.bf16.mxu0 %v4786_v37  ;;  %4408 = vmatprep.subr.bf16.mxu1 %v4787_v38  ;;  %v4805_v31 = vld [vmem:[%s6054_s10 + $0x190] sm:$0xff]   ;;  %v4806_v38 = vld [vmem:[%s6054_s10 + $0x148] sm:$0xff]  }
0x1070   : > { %v2503_v47 = vmax.f32 %v2289_v39, 0.0  ;;  %v2505_v48 = vmax.f32 %v2330_v32, 0.0  ;;  %v4808_v32 = vld [vmem:[%s6054_s10 + $0x108] sm:$0xff]   ;;  %v4811_v42 = vld [vmem:[%s6054_s10 + $0x1c0] sm:$0xff]  }
0x1071   : > { %v2291_v49 = vpop.f32.mrf.mxu0  ;;  %v2332_v50 = vpop.f32.mrf.mxu1 }
0x1072   : > { %v2519_v51 = vpack.c.bf16 %v2503_v47, %v2503_v47  ;;  %v2521_v52 = vpack.c.bf16 %v2505_v48, %v2505_v48  ;;  %4387 = vmatpush3.bf16.msra.mxu0 %v4788_v40  ;;  %4409 = vmatpush3.bf16.msra.mxu1 %v4789_v41  ;;  %v4809_v40 = vld [vmem:[%s6054_s10 + $0x188] sm:$0xff]   ;;  %v2287_v41 = vadd.f32 %v5673_v35, %v1946_v33  ;;  %v4812_v35 = vld [vmem:[%s6054_s10 + $0x100] sm:$0xff]   ;;  %v4814_v48 = vld [vmem:[%s6054_s10 + $0x278] sm:$0xff]  }
0x1073   : > { %v5701_v55 = vpop.f32.mrf.mxu0  ;;  %v5703_v56 = vpop.f32.mrf.mxu1  ;;  %4388 = vmatprep.subr.bf16.mxu0 %v4790_v44  ;;  %4410 = vmatprep.subr.bf16.mxu1 %v4791_v45  ;;  %v4815_v49 = vld [vmem:[%s6054_s10 + $0x2f8] sm:$0xff]   ;;  %v1962_v33 = vrot.slane %v5633_v58, %v5153_v27  ;;  %v1982_v27 = vrot.slane %v5633_v58, %v1949_v16  ;;  %v4842_v16 = vld [vmem:[%s6054_s10 + $0x240] sm:$0xff]  }
0x1074   : > { %3673 = vmatprep.mubr.bf16.mxu0 %v2519_v51  ;;  %3713 = vmatprep.mubr.bf16.mxu1 %v2521_v52  ;;  %v2502_v45 = vmax.f32 %v2287_v41, 0.0  ;;  %v4816_v52 = vld [vmem:[%s6054_s10 + $0x238] sm:$0xff]  }
0x1075   : > { %v2370_v4 = vpop.f32.mrf.mxu0  ;;  %v2411_v5 = vpop.f32.mrf.mxu1 }
0x1076   : > { %4389 = vmatpush3.bf16.msra.mxu0 %v4792_v53  ;;  %4411 = vmatpush3.bf16.msra.mxu1 %v4793_v54  ;;  %v2371_v43 = vadd.f32 %v2370_v4, %v1966_v1  ;;  %v2518_v53 = vpack.c.bf16 %v2502_v45, %v2502_v45  ;;  %v4818_v4 = vld [vmem:[%s6054_s10 + $0x270] sm:$0xff]   ;;  %v4840_v1 = vld [vmem:[%s6054_s10 + $0x208] sm:$0xff]  }
0x1077   : > { %v2372_v8 = vpop.f32.mrf.mxu0  ;;  %v2413_v12 = vpop.f32.mrf.mxu1  ;;  %4390 = vmatprep.subr.bf16.mxu0 %v4794_v2  ;;  %4412 = vmatprep.subr.bf16.mxu1 %v4795_v3  ;;  %v4817_v2 = vld [vmem:[%s6054_s10 + $0x2b8] sm:$0xff]  }
0x1078   : > { %v2507_v50 = vmax.f32 %v2371_v43, 0.0  ;;  %v4822_v8 = vld [vmem:[%s6054_s10 + $0x268] sm:$0xff]  }
0x1079   : > { %v2373_v18 = vpop.f32.mrf.mxu0  ;;  %v2414_v19 = vpop.f32.mrf.mxu1  ;;  %v4823_v12 = vld [vmem:[%s6054_s10 + $0x2e8] sm:$0xff]  }
0x107a   : > { %4391 = vmatpush3.bf16.msra.mxu0 %v4796_v9  ;;  %4413 = vmatpush3.bf16.msra.mxu1 %v4797_v10  ;;  %v2523_v3 = vpack.c.bf16 %v2507_v50, %v2507_v50  ;;  %v4820_v9 = vld [vmem:[%s6054_s10 + $0x230] sm:$0xff]   ;;  %v4827_v18 = vld [vmem:[%s6054_s10 + $0x2e0] sm:$0xff]   ;;  %v4855_v50 = vld [vmem:[%s6054_s10 + $0x3e8] sm:$0xff]  }
0x107b   : > { %v2450_v20 = vpop.f32.mrf.mxu0  ;;  %v2491_v21 = vpop.f32.mrf.mxu1  ;;  %4392 = vmatprep.subr.bf16.mxu0 %v4798_v13  ;;  %4414 = vmatprep.subr.bf16.mxu1 %v4799_v14  ;;  %v4821_v10 = vld [vmem:[%s6054_s10 + $0x2b0] sm:$0xff]   ;;  %v4824_v13 = vld [vmem:[%s6054_s10 + $0x228] sm:$0xff]   ;;  %v4828_v19 = vld [vmem:[%s6054_s10 + $0x220] sm:$0xff]  }
0x107c   : > { %v5737_v24 = vadd.f32 %v2450_v20, %v1978_v15  ;;  %v5740_v25 = vadd.f32 %v2491_v21, %v5638_v59  ;;  %v1954_v59 = vrot.slane %v5644_v62, %v1953_v57  ;;  %v1974_v57 = vrot.slane %v5633_v58, %v1941_v0  ;;  %v4810_v0 = vld [vmem:[%s6054_s10 + $0x140] sm:$0xff]   ;;  %v4825_v14 = vld [vmem:[%s6054_s10 + $0x2a8] sm:$0xff]   ;;  %v4831_v20 = vld [vmem:[%s6054_s10 + $0x2d8] sm:$0xff]  }
0x107d   : > { %v5742_v29 = vpop.f32.mrf.mxu0  ;;  %v5744_v28 = vpop.f32.mrf.mxu1  ;;  %v4826_v15 = vld [vmem:[%s6054_s10 + $0x260] sm:$0xff]   ;;  %v4832_v21 = vld [vmem:[%s6054_s10 + $0x218] sm:$0xff]  }
0x107e   : > { %4393 = vmatpush3.bf16.msra.mxu0 %v4800_v61  ;;  %4415 = vmatpush3.bf16.msra.mxu1 %v4801_v11  ;;  %v2328_v63 = vadd.f32 %v5675_v36, %v1954_v59  ;;  %v2412_v44 = vadd.f32 %v2411_v5, %v1974_v57  ;;  %v4813_v36 = vld [vmem:[%s6054_s10 + $0x180] sm:$0xff]   ;;  %v4819_v5 = vld [vmem:[%s6054_s10 + $0x2f0] sm:$0xff]   ;;  %v4830_v11 = vld [vmem:[%s6054_s10 + $0x258] sm:$0xff]  }
0x107f   : > { %v2454_v34 = vpop.f32.mrf.mxu0  ;;  %v2495_v37 = vpop.f32.mrf.mxu1  ;;  %4394 = vmatprep.subr.bf16.mxu0 %v4802_v22  ;;  %4416 = vmatprep.subr.bf16.mxu1 %v4803_v23  ;;  %v4829_v61 = vld [vmem:[%s6054_s10 + $0x2a0] sm:$0xff]   ;;  %v4833_v22 = vld [vmem:[%s6054_s10 + $0x298] sm:$0xff]   ;;  %v4834_v23 = vld [vmem:[%s6054_s10 + $0x250] sm:$0xff]  }
0x1080   : > { %v2504_v47 = vmax.f32 %v2328_v63, 0.0  ;;  %v2509_v51 = vmax.f32 %v2412_v44, 0.0  ;;  %v4837_v59 = vld [vmem:[%s6054_s10 + $0x290] sm:$0xff]   ;;  %v4838_v34 = vld [vmem:[%s6054_s10 + $0x248] sm:$0xff]   ;;  %v1970_v37 = vrot.slane %v5633_v58, %v1937_v60  ;;  %v2369_v60 = vadd.f32 %v5701_v55, %v1962_v33  ;;  %v4848_v63 = vld [vmem:[%s6054_s10 + $0x338] sm:$0xff]  }
0x1081   : > { %v2455_v62 = vpop.f32.mrf.mxu0  ;;  %v2496_v39 = vpop.f32.mrf.mxu1  ;;  %v4841_v57 = vld [vmem:[%s6054_s10 + $0x288] sm:$0xff]   ;;  %v4850_v44 = vld [vmem:[%s6054_s10 + $0x370] sm:$0xff]  }
0x1082   : > { %4395 = vmatpush3.bf16.msra.mxu0 %v4804_v30  ;;  %4417 = vmatpush3.bf16.msra.mxu1 %v4805_v31  ;;  %v2520_v54 = vpack.c.bf16 %v2504_v47, %v2504_v47  ;;  %v2525_v7 = vpack.c.bf16 %v2509_v51, %v2509_v51  ;;  %v4835_v30 = vld [vmem:[%s6054_s10 + $0x2d0] sm:$0xff]   ;;  %v2410_v26 = vadd.f32 %v5703_v56, %v1970_v37  ;;  %v4844_v62 = vld [vmem:[%s6054_s10 + $0x200] sm:$0xff]   ;;  %v2506_v39 = vmax.f32 %v2369_v60, 0.0  ;;  %v4856_v51 = vld [vmem:[%s6054_s10 + $0x328] sm:$0xff]  }
0x1083   : > { %4396 = vmatprep.subr.bf16.mxu0 %v4806_v38  ;;  %4418 = vmatprep.subr.bf16.mxu1 %v4807_v6  ;;  %v4836_v31 = vld [vmem:[%s6054_s10 + $0x210] sm:$0xff]   ;;  %v4839_v38 = vld [vmem:[%s6054_s10 + $0x2c8] sm:$0xff]   ;;  %v1990_v6 = vrot.slane %v5633_v58, %v1957_v17  ;;  %v4843_v58 = vld [vmem:[%s6054_s10 + $0x2c0] sm:$0xff]   ;;  %v2453_v17 = vadd.f32 %v5742_v29, %v1982_v27 }
0x1084   : > { %v4845_v56 = vld [vmem:[%s6054_s10 + $0x280] sm:$0xff]   ;;  %v4847_v29 = vld [vmem:[%s6054_s10 + $0x3f8] sm:$0xff]   ;;  %v4852_v47 = vld [vmem:[%s6054_s10 + $0x330] sm:$0xff]  }
0x1085   : > { %v2494_v55 = vadd.f32 %v5744_v28, %v1990_v6  ;;  %v2511_v28 = vmax.f32 %v2453_v17, 0.0 }
0x1086   : > { %4397 = vmatpush3.bf16.msra.mxu0 %v4808_v32  ;;  %4419 = vmatpush3.bf16.msra.mxu1 %v4809_v40  ;;  %v4846_v32 = vld [vmem:[%s6054_s10 + $0x378] sm:$0xff]   ;;  %v2508_v40 = vmax.f32 %v2410_v26, 0.0 }
0x1087   : > { %4398 = vmatprep.subr.bf16.mxu0 %v4810_v0  ;;  %4420 = vmatprep.subr.bf16.mxu1 %v4811_v42  ;;  %v2513_v41 = vmax.f32 %v2494_v55, 0.0  ;;  %v2522_v0 = vpack.c.bf16 %v2506_v39, %v2506_v39  ;;  %v4849_v42 = vld [vmem:[%s6054_s10 + $0x3b8] sm:$0xff]  }
0x1088   : > { %v2524_v43 = vpack.c.bf16 %v2508_v40, %v2508_v40 }
0x1089   : > { %v2529_v45 = vpack.c.bf16 %v2513_v41, %v2513_v41 }
0x108a   : > { %4399 = vmatpush3.bf16.msra.mxu0 %v4812_v35  ;;  %4421 = vmatpush3.bf16.msra.mxu1 %v4813_v36  ;;  %v2527_v35 = vpack.c.bf16 %v2511_v28, %v2511_v28  ;;  %v4851_v36 = vld [vmem:[%s6054_s10 + $0x3f0] sm:$0xff]  }
0x108b   : > { %4428 = vmatprep.subr.bf16.mxu0 %v4814_v48  ;;  %4450 = vmatprep.subr.bf16.mxu1 %v4815_v49  ;;  %v4853_v48 = vld [vmem:[%s6054_s10 + $0x3b0] sm:$0xff]   ;;  %v4854_v49 = vld [vmem:[%s6054_s10 + $0x368] sm:$0xff]  }
0x108d   : > { %3674 = vmatmul.mubr.bf16.vlgmr.msra.gmra.mxu0 %v2518_v53  ;;  %3714 = vmatmul.mubr.bf16.vlgmr.msra.gmra.mxu1 %v2520_v54  ;;  %v4858_v53 = vld [vmem:[%s6054_s10 + $0x360] sm:$0xff]  }
0x108e   : > { %4429 = vmatpush3.bf16.msra.mxu0 %v4816_v52  ;;  %3753 = vmatprep.mubr.bf16.mxu0 %v2523_v3  ;;  %v4857_v52 = vld [vmem:[%s6054_s10 + $0x3a8] sm:$0xff]   ;;  %v4859_v54 = vld [vmem:[%s6054_s10 + $0x3e0] sm:$0xff]  }
0x108f   : > { %4451 = vmatpush3.bf16.msra.mxu1 %v4817_v2  ;;  %3793 = vmatprep.mubr.bf16.mxu1 %v2525_v7  ;;  %v4860_v2 = vld [vmem:[%s6054_s10 + $0x320] sm:$0xff]   ;;  %v4864_v7 = vld [vmem:[%s6054_s10 + $0x318] sm:$0xff]  }
0x1090   : > { %4430 = vmatprep.subr.bf16.mxu0 %v4818_v4  ;;  %4452 = vmatprep.subr.bf16.mxu1 %v4819_v5  ;;  %v4861_v3 = vld [vmem:[%s6054_s10 + $0x3a0] sm:$0xff]   ;;  %v4862_v4 = vld [vmem:[%s6054_s10 + $0x358] sm:$0xff]  }
0x1091   : > { %v4863_v5 = vld [vmem:[%s6054_s10 + $0x3d8] sm:$0xff]  }
0x1092   : > { %4431 = vmatpush3.bf16.msra.mxu0 %v4820_v9  ;;  %v4865_v9 = vld [vmem:[%s6054_s10 + $0x398] sm:$0xff]  }
0x1093   : > { %4453 = vmatpush3.bf16.msra.mxu1 %v4821_v10  ;;  %4432 = vmatprep.subr.bf16.mxu0 %v4822_v8  ;;  %v4866_v10 = vld [vmem:[%s6054_s10 + $0x350] sm:$0xff]  }
0x1094   : > { %4454 = vmatprep.subr.bf16.mxu1 %v4823_v12  ;;  %v4867_v8 = vld [vmem:[%s6054_s10 + $0x3d0] sm:$0xff]  }
0x1095   : > { %v4868_v12 = vld [vmem:[%s6054_s10 + $0x310] sm:$0xff]  }
0x1096   : > { %4433 = vmatpush3.bf16.msra.mxu0 %v4824_v13  ;;  %v4869_v13 = vld [vmem:[%s6054_s10 + $0x390] sm:$0xff]  }
0x1097   : > { %4455 = vmatpush3.bf16.msra.mxu1 %v4825_v14  ;;  %4434 = vmatprep.subr.bf16.mxu0 %v4826_v15  ;;  %v4870_v14 = vld [vmem:[%s6054_s10 + $0x348] sm:$0xff]  }
0x1098   : > { %4456 = vmatprep.subr.bf16.mxu1 %v4827_v18  ;;  %v4871_v15 = vld [vmem:[%s6054_s10 + $0x3c8] sm:$0xff]  }
0x1099   : > { %v4872_v18 = vld [vmem:[%s6054_s10 + $0x308] sm:$0xff]  }
0x109a   : > { %4435 = vmatpush3.bf16.msra.mxu0 %v4828_v19  ;;  %v4873_v19 = vld [vmem:[%s6054_s10 + $0x388] sm:$0xff]  }
0x109b   : > { %4457 = vmatpush3.bf16.msra.mxu1 %v4829_v61  ;;  %4436 = vmatprep.subr.bf16.mxu0 %v4830_v11  ;;  %v4874_v61 = vld [vmem:[%s6054_s10 + $0x340] sm:$0xff]  }
0x109c   : > { %4458 = vmatprep.subr.bf16.mxu1 %v4831_v20  ;;  %v4875_v11 = vld [vmem:[%s6054_s10 + $0x3c0] sm:$0xff]  }
0x109d   : > { %v4876_v20 = vld [vmem:[%s6054_s10 + $0x300] sm:$0xff]  }
0x109e   : > { %4437 = vmatpush3.bf16.msra.mxu0 %v4832_v21  ;;  %v2510_v21 = vmax.f32 %v5737_v24, 0.0  ;;  %v4147_v24 = vld [vmem:[%s6055_s11] ss:$0 sm:$0xff] }
0x109f   : > { %4459 = vmatpush3.bf16.msra.mxu1 %v4833_v22  ;;  %4438 = vmatprep.subr.bf16.mxu0 %v4834_v23  ;;  %v4877_v22 = vld [vmem:[%s6054_s10 + $0x380] sm:$0xff]   ;;  %v2512_v23 = vmax.f32 %v5740_v25, 0.0 }
0x10a0   : > { %4460 = vmatprep.subr.bf16.mxu1 %v4835_v30  ;;  %v2526_v30 = vpack.c.bf16 %v2510_v21, %v2510_v21 }
0x10a2   : > { %4439 = vmatpush3.bf16.msra.mxu0 %v4836_v31  ;;  %v2528_v31 = vpack.c.bf16 %v2512_v23, %v2512_v23  ;;  %v4899_v23 = vld [vmem:[%s6050_s6] ss:$0 sm:$0xff] }
0x10a3   : > { %4461 = vmatpush3.bf16.msra.mxu1 %v4837_v59  ;;  %4440 = vmatprep.subr.bf16.mxu0 %v4838_v34 }
0x10a4   : > { %4462 = vmatprep.subr.bf16.mxu1 %v4839_v38 }
0x10a6   : > { %4441 = vmatpush3.bf16.msra.mxu0 %v4840_v1 }
0x10a7   : > { %4463 = vmatpush3.bf16.msra.mxu1 %v4841_v57  ;;  %4442 = vmatprep.subr.bf16.mxu0 %v4842_v16 }
0x10a8   : > { %4464 = vmatprep.subr.bf16.mxu1 %v4843_v58 }
0x10aa   : > { %4443 = vmatpush3.bf16.msra.mxu0 %v4844_v62 }
0x10ab   : > { %4465 = vmatpush3.bf16.msra.mxu1 %v4845_v56  ;;  %4472 = vmatprep.subr.bf16.mxu0 %v4846_v32 }
0x10ac   : > { %4494 = vmatprep.subr.bf16.mxu1 %v4847_v29 }
0x10ad   : > { %3754 = vmatmul.mubr.bf16.vlgmr.msra.gmra.mxu0 %v2522_v0 }
0x10ae   : > { %3794 = vmatmul.mubr.bf16.vlgmr.msra.gmra.mxu1 %v2524_v43  ;;  %4473 = vmatpush3.bf16.msra.mxu0 %v4848_v63 }
0x10af   : > { %3833 = vmatprep.mubr.bf16.mxu0 %v2527_v35  ;;  %4495 = vmatpush3.bf16.msra.mxu1 %v4849_v42 }
0x10b0   : > { %3873 = vmatprep.mubr.bf16.mxu1 %v2529_v45  ;;  %4474 = vmatprep.subr.bf16.mxu0 %v4850_v44 }
0x10b1   : > { %4496 = vmatprep.subr.bf16.mxu1 %v4851_v36 }
0x10b2   : > { %4475 = vmatpush3.bf16.msra.mxu0 %v4852_v47 }
0x10b3   : > { %4497 = vmatpush3.bf16.msra.mxu1 %v4853_v48  ;;  %4476 = vmatprep.subr.bf16.mxu0 %v4854_v49 }
0x10b4   : > { %4498 = vmatprep.subr.bf16.mxu1 %v4855_v50 }
0x10b6   : > { %4477 = vmatpush3.bf16.msra.mxu0 %v4856_v51 }
0x10b7   : > { %4499 = vmatpush3.bf16.msra.mxu1 %v4857_v52  ;;  %4478 = vmatprep.subr.bf16.mxu0 %v4858_v53 }
0x10b8   : > { %4500 = vmatprep.subr.bf16.mxu1 %v4859_v54 }
0x10ba   : > { %4479 = vmatpush3.bf16.msra.mxu0 %v4860_v2 }
0x10bb   : > { %4501 = vmatpush3.bf16.msra.mxu1 %v4861_v3  ;;  %4480 = vmatprep.subr.bf16.mxu0 %v4862_v4 }
0x10bc   : > { %4502 = vmatprep.subr.bf16.mxu1 %v4863_v5 }
0x10be   : > { %4481 = vmatpush3.bf16.msra.mxu0 %v4864_v7 }
0x10bf   : > { %4503 = vmatpush3.bf16.msra.mxu1 %v4865_v9  ;;  %4482 = vmatprep.subr.bf16.mxu0 %v4866_v10 }
0x10c0   : > { %4504 = vmatprep.subr.bf16.mxu1 %v4867_v8 }
0x10c2   : > { %4483 = vmatpush3.bf16.msra.mxu0 %v4868_v12 }
0x10c3   : > { %4505 = vmatpush3.bf16.msra.mxu1 %v4869_v13  ;;  %4484 = vmatprep.subr.bf16.mxu0 %v4870_v14 }
0x10c4   : > { %4506 = vmatprep.subr.bf16.mxu1 %v4871_v15 }
0x10c6   : > { %4485 = vmatpush3.bf16.msra.mxu0 %v4872_v18 }
0x10c7   : > { %4507 = vmatpush3.bf16.msra.mxu1 %v4873_v19  ;;  %4486 = vmatprep.subr.bf16.mxu0 %v4874_v61 }
0x10c8   : > { %4508 = vmatprep.subr.bf16.mxu1 %v4875_v11 }
0x10ca   : > { %4487 = vmatpush3.bf16.msra.mxu0 %v4876_v20 }
0x10cb   : > { %4509 = vmatpush3.bf16.msra.mxu1 %v4877_v22 }
0x10cd   : > { %3834 = vmatmul.mubr.bf16.vlgmr.msra.gmra.mxu0 %v2526_v30 }
0x10ce   : > { %3874 = vmatmul.mubr.bf16.vlgmr.msra.gmra.mxu1 %v2528_v31  ;;  %v4900_v31 = vld [vmem:[%s6051_s7] ss:$0 sm:$0xff] }
0x112d   : > { %v4356_v33 = vpop.f32.mrf.mxu0  ;;  %v4378_v59 = vpop.f32.mrf.mxu1 }
0x112f   : > { %v4357_v34 = vpop.f32.mrf.mxu0  ;;  %v4379_v37 = vpop.f32.mrf.mxu1 }
0x1130   : > { %v4358_v38 = vadd.f32 %v4357_v34, %v4356_v33  ;;  %v4380_v27 = vadd.f32 %v4379_v37, %v4378_v59 }
0x1131   : > { %v4359_v6 = vpop.f32.mrf.mxu0  ;;  %v4381_v1 = vpop.f32.mrf.mxu1 }
0x1132   : > { %v3596_v25 = vadd.f32 %v4358_v38, %v4147_v24 }
0x1133   : > { %v4360_v60 = vpop.f32.mrf.mxu0  ;;  %v4382_v57 = vpop.f32.mrf.mxu1 }
0x1134   : > { %v3636_v16 = vadd.f32 %v4380_v27, %v3596_v25 }
0x114d   : > { %v4400_v26 = vpop.f32.mrf.mxu0  ;;  %v4422_v58 = vpop.f32.mrf.mxu1 }
0x114f   : > { %v4401_v17 = vpop.f32.mrf.mxu0  ;;  %v4423_v55 = vpop.f32.mrf.mxu1 }
0x1150   : > { %v4402_v44 = vadd.f32 %v4401_v17, %v4400_v26  ;;  %v4424_v36 = vadd.f32 %v4423_v55, %v4422_v58 }
0x1151   : > { %v4403_v62 = vpop.f32.mrf.mxu0  ;;  %v4425_v39 = vpop.f32.mrf.mxu1 }
0x1152   : > { %v3676_v35 = vadd.f32 %v4402_v44, %v3636_v16 }
0x1153   : > { %v4404_v56 = vpop.f32.mrf.mxu0  ;;  %v4426_v32 = vpop.f32.mrf.mxu1 }
0x1154   : > { %v3716_v47 = vadd.f32 %v4424_v36, %v3676_v35 }
0x116d   : > { %v4444_v40 = vpop.f32.mrf.mxu0 }
0x116e   : > { %v4466_v29 = vpop.f32.mrf.mxu1 }
0x116f   : > { %v4445_v28 = vpop.f32.mrf.mxu0 }
0x1170   : > { %v4467_v41 = vpop.f32.mrf.mxu1  ;;  %v4446_v45 = vadd.f32 %v4445_v28, %v4444_v40 }
0x1171   : > { %v4447_v63 = vpop.f32.mrf.mxu0  ;;  %v4468_v50 = vadd.f32 %v4467_v41, %v4466_v29 }
0x1172   : > { %v4469_v0 = vpop.f32.mrf.mxu1  ;;  %v3756_v48 = vadd.f32 %v4446_v45, %v3716_v47 }
0x1173   : > { %v4448_v42 = vpop.f32.mrf.mxu0 }
0x1174   : > { %v4470_v43 = vpop.f32.mrf.mxu1  ;;  %v3796_v53 = vadd.f32 %v4468_v50, %v3756_v48 }
0x118d   : > { %v4488_v49 = vpop.f32.mrf.mxu0 }
0x118e   : > { %v4510_v51 = vpop.f32.mrf.mxu1 }
0x118f   : > { %v4489_v52 = vpop.f32.mrf.mxu0 }
0x1190   : > { %v4490_v54 = vadd.f32 %v4489_v52, %v4488_v49  ;;  %v4511_v2 = vpop.f32.mrf.mxu1 }
0x1191   : > { %v4491_v3 = vpop.f32.mrf.mxu0  ;;  %v4512_v5 = vadd.f32 %v4511_v2, %v4510_v51 }
0x1192   : > { %v3836_v4 = vadd.f32 %v4490_v54, %v3796_v53  ;;  %v4513_v7 = vpop.f32.mrf.mxu1 }
0x1193   : > { %v4492_v9 = vpop.f32.mrf.mxu0 }
0x1194   : > { %v3876_v10 = vadd.f32 %v4512_v5, %v3836_v4  ;;  %v4514_v8 = vpop.f32.mrf.mxu1 }
0x1196   : > { %v3881_v12 = vadd.f32 %v3876_v10, %v5451_v46 }
0x1198   : > { %v3882_v13 = vsel %vm453_vm1, %v3881_v12, 0.0 }
0x1199   : > { %3883 = vadd.xlane.f32.xlu0 %v3882_v13 }
0x1222   : > { %v3884_v14 = vpop.xlane.xlu0 %3883 }
0x1223   : > { %v3885_v15 = vmul.f32 0.03125, %v3884_v14 }
0x1225   : > { %v3886_v18 = vsub.f32 %v3881_v12, %v3885_v15 }
0x1227   : > { %v3887_v19 = vmul.f32 %v3886_v18, %v3886_v18 }
0x1229   : > { %v3888_v61 = vsel %vm453_vm1, %v3887_v19, 0.0 }
0x122a   : > { %3889 = vadd.xlane.f32.xlu1 %v3888_v61 }
0x12b3   : > { %v3890_v11 = vpop.xlane.xlu1 %3889 }
0x12b4   : > { %v3891_v20 = vmul.f32 0.03125, %v3890_v11 }
0x12b6   : > { %v3892_v21 = vadd.f32 1e-05, %v3891_v20 }
0x12b8   : > { %4896 = vrsqrt.f32 %v3892_v21 }
0x12c5   : > { %v4897_v22 = vpop.eup %4896 }
0x12c6   : > { %v3894_v46 = vmul.f32 %v4897_v22, %v3886_v18 }
0x12c8   : > { %v3895_v30 = vmul.f32 %v4899_v23, %v3894_v46 }
0x12ca   : > { %v3896_v33 = vadd.f32 %v4900_v31, %v3895_v30 }
0x12cc   : > { %3897 = vst.msk [vmem:[%s415_s26] sm:$0xff] %vm453_vm1, %v3896_v33 }
0x12cd   : > { %4914 = shalt.err (!%p4911_p3)
}
0x12ce   : > { %s4915_s1 = scalar_lea.hbm %s3910_s2, 128  ;;  %s4919_s26 = scalar_lea.hbm %s6056_s12, 256 }
0x12cf   : > { %p4916_p4 = scmp.ne.s32.totalorder %s3910_s2, %s4915_s1  ;;  %p4920_p9 = scmp.lt.s32.totalorder %s3910_s2, %s6056_s12 }
0x12d0   : > { %p4921_p10 = scmp.lt.s32.totalorder %s4919_s26, %s4915_s1 }
0x12d1   : > { %p4917_p7 = pnand %p4916_p4, %p5070_p5 }
0x12d2   : > { %p4922_p11 = por %p4921_p10, %p4920_p9 }
0x12d3   : > { %p4918_p8 = pneg %p4917_p7 }
0x12d5   : > { %p4923_p12 = pnand %p4922_p11, %p4918_p8 }
0x12d7   : > { %4926 = shalt.err (!%p4923_p12)
}
0x12d8   : > { %4684 = dma.vmem_to_hbm [thread:$0]  (%p5070_p5), %s3913_s28, 128, %s3910_s2, %s3899_s25  }
0x12d9 PF: > { %p4690_p13 = scmp.ge.s32.totalorder %s4961_s24, 2  ;;  %s3924_s3 = sand.u32 1, %s4949_s21  }
0x12da   : > { %s3925_s19 = scalar_lea.sflag [#allocation3], %s3924_s3 }
0x12db   : > { %p4687_p0 = pnand %p4690_p13, %p5074_p6 }
0x12dd   : > { %p4688_p1 = pneg %p4687_p0 }
0x12df   : > { %4944 = dma.done.wait (%p4688_p1), %s3925_s19, 128  }
0x12e0   : > { %4946 = vsyncadd (%p4688_p1), %s3925_s19, 4294967168  ;;  %p22_p2 = scmp.ge.s32.totalorder %s5057_s27, 4   ;;  %s6069_s21 = smov %s4953_s22 }
0x12e1   : > { %s6070_s22 = smov %s4957_s23  ;;  %s6071_s23 = smov %s5068_s30 }
0x12e2   : > { %s6072_s24 = smov %s5057_s27  ;;  %24 = sbr.rel (!%p22_p2) target bundleno = 8 (0x8), region = 131 }
0x12e7   :  { %3930 = vsyncpa [#allocation3], 1 }
0x12e8   :  { %3932 = vsyncpa [#allocation3 + $0x1], 1 }

</bundles_post_ra>
